<compile_context>
chip_gen: v7x
topology: tpu7x:2x2x1
jax: 0.10.0
libtpu: 0.0.40
codegen_flags: <defaults>
</compile_context>

<pallas_src>
import functools

import jax
import jax.numpy as jnp
from jax.experimental import pallas as pl
from jax.experimental.pallas import tpu as pltpu


# ----------------------------------------------------------------------------
# helpers used inside the kernel
# ----------------------------------------------------------------------------
def _layernorm(x, w, b, eps=1e-5):
    mu = jnp.mean(x, axis=-1, keepdims=True)
    var = jnp.mean(jnp.square(x - mu), axis=-1, keepdims=True)
    return (x - mu) * jax.lax.rsqrt(var + eps) * w + b


def _mm(a, b):
    # MXU matmul in bf16 with f32 accumulation (weights pre-cast in the wrapper).
    return jnp.dot(a.astype(jnp.bfloat16), b.astype(jnp.bfloat16),
                   preferred_element_type=jnp.float32)


# ----------------------------------------------------------------------------
# fused forward kernel: conv pos-emb + depth transformer layers + fc head
# ----------------------------------------------------------------------------
def ocet_fused_kernel(x_ref, conv_ref,
                      ln1w_ref, ln1b_ref, wqkv_ref, wo_ref, bo_ref,
                      ln2w_ref, ln2b_ref, w1_ref, b1_ref, w2_ref, b2_ref,
                      fcw_ref, fcb_ref, o_ref,
                      *, depth, heads, dim_head, seq_len, unroll_depth):
    T = seq_len
    Bt, D = x_ref.shape            # Bt = Bblk * T
    Bblk = Bt // T
    inner = heads * dim_head

    x = x_ref[...]                                             # (Bt, D) f32

    # ---- conv positional embedding: h = x + sigmoid(conv4x1_same(x) + b) ----
    # PyTorch 'same' for k=4: pad 1 before / 2 after along T, i.e.
    #   out[t] = w0*x[t-1] + w1*x[t] + w2*x[t+1] + w3*x[t+2]   (zero outside [0,T))
    # implemented as sublane rolls + masked VPU adds (no MXU, no band matrix).
    t_idx = jax.lax.broadcasted_iota(jnp.int32, (Bt, D), 0) % T
    xm1 = pltpu.roll(x, shift=1, axis=0)          # row r <- x[r-1] (wraps, masked)
    xp1 = pltpu.roll(x, shift=Bt - 1, axis=0)     # row r <- x[r+1]
    xp2 = pltpu.roll(x, shift=Bt - 2, axis=0)     # row r <- x[r+2]
    conv = (conv_ref[1] * x
            + jnp.where(t_idx >= 1, conv_ref[0] * xm1, 0.0)
            + jnp.where(t_idx <= T - 2, conv_ref[2] * xp1, 0.0)
            + jnp.where(t_idx <= T - 3, conv_ref[3] * xp2, 0.0)
            + conv_ref[4])
    h = x + jax.nn.sigmoid(conv)

    # ---- one transformer layer (PreNorm attention + PreNorm feed-forward) ----
    def layer_body(d, h):
        # PreNorm + multi-head self-attention (attention scale folded into Wq)
        xn = _layernorm(h, ln1w_ref[d], ln1b_ref[d])
        qkv = _mm(xn, wqkv_ref[d]).astype(jnp.bfloat16)        # (Bt, 3*inner)
        head_outs = []
        for hd in range(heads):   # unrolled: Mosaic dot_general supports one batch dim
            q = qkv[:, hd * dim_head:(hd + 1) * dim_head].reshape(Bblk, T, dim_head)
            k = qkv[:, inner + hd * dim_head:inner + (hd + 1) * dim_head
                    ].reshape(Bblk, T, dim_head)
            v = qkv[:, 2 * inner + hd * dim_head:2 * inner + (hd + 1) * dim_head
                    ].reshape(Bblk, T, dim_head)
            dots = jnp.einsum('bid,bjd->bij', q, k,
                              preferred_element_type=jnp.float32)
            dots = dots - jnp.max(dots, axis=-1, keepdims=True)
            e = jnp.exp(dots)
            p = (e * pl.reciprocal(jnp.sum(e, axis=-1, keepdims=True),
                                   approx=True)).astype(jnp.bfloat16)
            oh = jnp.einsum('bij,bjd->bid', p, v,
                            preferred_element_type=jnp.float32)   # (Bblk, T, dh)
            head_outs.append(oh.reshape(Bt, dim_head))
        attn_out = head_outs[0] if heads == 1 else jnp.concatenate(head_outs, axis=-1)
        x1 = h + _mm(attn_out, wo_ref[d]) + bo_ref[d]            # single output projection

        # PreNorm + FeedForward: Linear -> GELU(exact) -> Linear
        x2n = _layernorm(x1, ln2w_ref[d], ln2b_ref[d])
        h1 = _mm(x2n, w1_ref[d]) + b1_ref[d]
        g = 0.5 * h1 * (1.0 + jax.lax.erf(h1 * (2.0 ** -0.5)))   # exact GELU (nn.GELU)
        return x1 + _mm(g, w2_ref[d]) + b2_ref[d]

    if depth <= unroll_depth:
        for d in range(depth):                    # small depth: static unroll
            h = layer_body(d, h)
    else:
        # large depth: bound per-layer live ranges / code size
        h = jax.lax.fori_loop(0, depth, layer_body, h)

    # ---- classifier head (tiny); token-0 selection happens in the wrapper ----
    o_ref[...] = _mm(h, fcw_ref[...]) + fcb_ref[...]


# ----------------------------------------------------------------------------
# wrapper-side plumbing (plain JAX)
# ----------------------------------------------------------------------------
def _pick_block_b(B, T, target_rows=512):
    divisors = [d for d in range(1, B + 1) if B % d == 0]
    fit = [d for d in divisors if d * T <= target_rows] or [1]
    best = max(fit)
    if B // best < 2:                       # keep >=2 grid steps for v7x megacore
        two_step = [d for d in divisors if B // d >= 2]
        if two_step:
            best = max(two_step)
    return best


def ocet_forward(x, params, *, heads, dim_head, block_b=None, unroll_depth=4):
    B, C_in, T, D = x.shape
    assert C_in == 1
    depth = len(params["layers"])
    num_classes = params["fc_w"].shape[1]
    inner = heads * dim_head
    scale = dim_head ** -0.5

    Bblk = block_b if block_b is not None else _pick_block_b(B, T)
    assert B % Bblk == 0
    G = B // Bblk
    Bt = Bblk * T
    assert Bt % 8 == 0, "Bblk*T must be a multiple of 8 (f32 sublane tile)"

    x2 = x[:, 0].reshape(B * T, D).astype(jnp.float32)        # (B*T, D) activation slab
    conv_wb = jnp.concatenate([params["conv_w"].reshape(-1),
                               params["conv_b"].reshape(-1)]).astype(jnp.float32)  # (5,)

    stack = lambda name: jnp.stack([lp[name] for lp in params["layers"]])
    ln1w, ln1b = stack("ln1_w"), stack("ln1_b")
    ln2w, ln2b = stack("ln2_w"), stack("ln2_b")
    bo, b1, b2 = stack("b_o"), stack("b1"), stack("b2")
    wqkv = stack("w_qkv")
    wqkv = wqkv.at[:, :, :inner].multiply(scale)              # fold attn scale into Wq
    wqkv = wqkv.astype(jnp.bfloat16)                          # matmul weights -> bf16
    wo = stack("w_o").astype(jnp.bfloat16)
    w1 = stack("w1").astype(jnp.bfloat16)
    w2 = stack("w2").astype(jnp.bfloat16)
    fcw = params["fc_w"].astype(jnp.bfloat16)
    fcb = params["fc_b"]

    def resident(a):   # whole array resident in VMEM; same block every grid step
        return pl.BlockSpec(a.shape, lambda i: (0,) * a.ndim)

    # VMEM budget: resident weights + double-buffered slab/output + temporaries
    resident_arrays = [ln1w, ln1b, wqkv, wo, bo, ln2w, ln2b, w1, b1, w2, b2, fcw, fcb]
    resident_bytes = sum(int(a.size) * a.dtype.itemsize for a in resident_arrays)
    slab_bytes = Bt * D * 4
    out_bytes = Bt * num_classes * 4
    vmem_limit = 2 * (resident_bytes + slab_bytes + out_bytes) + 24 * slab_bytes + (4 << 20)
    vmem_limit = int(min(max(vmem_limit, 32 << 20), 64 << 20))
    # TODO(synk): for very large depth, stream per-layer weights from HBM
    # (memory_space=pl.ANY + make_async_copy double-buffering) instead of
    # keeping the full stack resident.

    out = pl.pallas_call(
        functools.partial(ocet_fused_kernel, depth=depth, heads=heads,
                          dim_head=dim_head, seq_len=T, unroll_depth=unroll_depth),
        out_shape=jax.ShapeDtypeStruct((B * T, num_classes), jnp.float32),
        grid=(G,),
        in_specs=[
            pl.BlockSpec((Bt, D), lambda i: (i, 0)),                  # activations
            pl.BlockSpec(memory_space=pltpu.MemorySpace.SMEM),        # conv taps + bias (5,)
            resident(ln1w), resident(ln1b), resident(wqkv), resident(wo), resident(bo),
            resident(ln2w), resident(ln2b), resident(w1), resident(b1),
            resident(w2), resident(b2), resident(fcw), resident(fcb),
        ],
        out_specs=pl.BlockSpec((Bt, num_classes), lambda i: (i, 0)),
        compiler_params=pltpu.CompilerParams(
            dimension_semantics=("parallel",), vmem_limit_bytes=vmem_limit),
    )(x2, conv_wb, ln1w, ln1b, wqkv, wo, bo, ln2w, ln2b, w1, b1, w2, b2, fcw, fcb)

    # token-0 selection (x[:, 0] in the PyTorch model)
    return out.reshape(B, T, num_classes)[:, 0, :]


# ----------------------------------------------------------------------------
# Deterministic synthetic parameters (shapes per OCET.__init__)
# ----------------------------------------------------------------------------
def init_params(key, *, dim, depth, heads, dim_head, mlp_dim, num_classes):
    inner = heads * dim_head
    keys = jax.random.split(key, 2 + depth)

    def dense(k, i, o, scale=0.05):
        return scale * jax.random.normal(k, (i, o), jnp.float32)

    kc = jax.random.split(keys[0], 2)
    params = {
        "conv_w": 0.2 * jax.random.normal(kc[0], (4,), jnp.float32),   # Conv2d(1,1,(4,1)) weight
        "conv_b": 0.1 * jax.random.normal(kc[1], (1,), jnp.float32),   # Conv2d bias
    }
    layers = []
    for d in range(depth):
        kl = jax.random.split(keys[2 + d], 8)
        layers.append(dict(
            ln1_w=jnp.ones((1, dim), jnp.float32),
            ln1_b=jnp.zeros((1, dim), jnp.float32),
            w_qkv=dense(kl[0], dim, 3 * inner),          # Linear(dim, 3*inner, bias=False)
            w_o=dense(kl[1], inner, dim),                # Linear(inner, dim)
            b_o=0.01 * jax.random.normal(kl[2], (1, dim), jnp.float32),
            ln2_w=jnp.ones((1, dim), jnp.float32),
            ln2_b=jnp.zeros((1, dim), jnp.float32),
            w1=dense(kl[3], dim, mlp_dim),               # Linear(dim, mlp_dim)
            b1=0.01 * jax.random.normal(kl[4], (1, mlp_dim), jnp.float32),
            w2=dense(kl[5], mlp_dim, dim),               # Linear(mlp_dim, dim)
            b2=0.01 * jax.random.normal(kl[6], (1, dim), jnp.float32),
        ))
    params["layers"] = layers
    kf = jax.random.split(keys[1], 2)
    params["fc_w"] = dense(kf[0], dim, num_classes)      # Linear(dim, num_classes)
    params["fc_b"] = 0.01 * jax.random.normal(kf[1], (1, num_classes), jnp.float32)
    return params


if __name__ == "__main__":
    B, T = 8, 8
    dim, depth, heads, dim_head, mlp_dim, num_classes = 32, 2, 2, 16, 64, 3

    key = jax.random.PRNGKey(0)
    kx, kp = jax.random.split(key)
    x = jax.random.normal(kx, (B, 1, T, dim), jnp.float32)   # NCHW, C=1
    params = init_params(kp, dim=dim, depth=depth, heads=heads, dim_head=dim_head,
                         mlp_dim=mlp_dim, num_classes=num_classes)

    fwd = jax.jit(functools.partial(ocet_forward, heads=heads, dim_head=dim_head))
    out = fwd(x, params)
    jax.block_until_ready(out)
    assert out.shape == (B, num_classes) and out.dtype == jnp.float32
    print("KERNEL_OK")
</pallas_src>

<mosaic_0001>
module attributes {stable_mosaic.version = 11 : i64} {
  func.func @ocet_fused_kernel(%arg0: i32, %arg1: memref<32x32xf32, #tpu.memory_space<vmem>>, %arg2: memref<5xf32, #tpu.memory_space<smem>>, %arg3: memref<2x1x32xf32, #tpu.memory_space<vmem>>, %arg4: memref<2x1x32xf32, #tpu.memory_space<vmem>>, %arg5: memref<2x32x96xbf16, #tpu.memory_space<vmem>>, %arg6: memref<2x32x32xbf16, #tpu.memory_space<vmem>>, %arg7: memref<2x1x32xf32, #tpu.memory_space<vmem>>, %arg8: memref<2x1x32xf32, #tpu.memory_space<vmem>>, %arg9: memref<2x1x32xf32, #tpu.memory_space<vmem>>, %arg10: memref<2x32x64xbf16, #tpu.memory_space<vmem>>, %arg11: memref<2x1x64xf32, #tpu.memory_space<vmem>>, %arg12: memref<2x64x32xbf16, #tpu.memory_space<vmem>>, %arg13: memref<2x1x32xf32, #tpu.memory_space<vmem>>, %arg14: memref<32x3xbf16, #tpu.memory_space<vmem>>, %arg15: memref<1x3xf32, #tpu.memory_space<vmem>>, %arg16: memref<32x3xf32, #tpu.memory_space<vmem>>) attributes {dimension_semantics = [#tpu.dimension_semantics<parallel>], iteration_bounds = array<i64: 2>, scalar_prefetch = 0 : i64, scratch_operands = 0 : i64, tpu.core_type = #tpu.core_type<tc>, window_params = [{transform_indices = @transform_0, window_bounds = array<i64: 32, 32>}, {transform_indices = @transform_1, window_bounds = array<i64: 5>}, {pipeline_mode = #tpu.pipeline_mode<synchronous>, transform_indices = @transform_2, window_bounds = array<i64: 2, 1, 32>}, {pipeline_mode = #tpu.pipeline_mode<synchronous>, transform_indices = @transform_3, window_bounds = array<i64: 2, 1, 32>}, {pipeline_mode = #tpu.pipeline_mode<synchronous>, transform_indices = @transform_4, window_bounds = array<i64: 2, 32, 96>}, {pipeline_mode = #tpu.pipeline_mode<synchronous>, transform_indices = @transform_5, window_bounds = array<i64: 2, 32, 32>}, {pipeline_mode = #tpu.pipeline_mode<synchronous>, transform_indices = @transform_6, window_bounds = array<i64: 2, 1, 32>}, {pipeline_mode = #tpu.pipeline_mode<synchronous>, transform_indices = @transform_7, window_bounds = array<i64: 2, 1, 32>}, {pipeline_mode = #tpu.pipeline_mode<synchronous>, transform_indices = @transform_8, window_bounds = array<i64: 2, 1, 32>}, {pipeline_mode = #tpu.pipeline_mode<synchronous>, transform_indices = @transform_9, window_bounds = array<i64: 2, 32, 64>}, {pipeline_mode = #tpu.pipeline_mode<synchronous>, transform_indices = @transform_10, window_bounds = array<i64: 2, 1, 64>}, {pipeline_mode = #tpu.pipeline_mode<synchronous>, transform_indices = @transform_11, window_bounds = array<i64: 2, 64, 32>}, {pipeline_mode = #tpu.pipeline_mode<synchronous>, transform_indices = @transform_12, window_bounds = array<i64: 2, 1, 32>}, {pipeline_mode = #tpu.pipeline_mode<synchronous>, transform_indices = @transform_13, window_bounds = array<i64: 32, 3>}, {pipeline_mode = #tpu.pipeline_mode<synchronous>, transform_indices = @transform_14, window_bounds = array<i64: 1, 3>}, {transform_indices = @transform_15, window_bounds = array<i64: 32, 3>}]} {
    %c0 = arith.constant 0 : index
    %c0_0 = arith.constant 0 : index
    %0 = vector.load %arg1[%c0, %c0_0] : memref<32x32xf32, #tpu.memory_space<vmem>>, vector<32x32xf32>
    %1 = tpu.iota {dimensions = array<i32: 0>} : vector<32x32xi32>
    %c8_i32 = arith.constant 8 : i32
    %c0_i32 = arith.constant 0 : i32
    %2 = arith.cmpi eq, %c8_i32, %c0_i32 : i32
    %c1_i32 = arith.constant 1 : i32
    %3 = arith.select %2, %c1_i32, %c8_i32 : i32
    %4 = vector.broadcast %3 : i32 to vector<32x32xi32>
    %5 = arith.remsi %1, %4 : vector<32x32xi32>
    %c0_i32_1 = arith.constant 0 : i32
    %6 = vector.broadcast %c0_i32_1 : i32 to vector<32x32xi32>
    %7 = arith.cmpi ne, %5, %6 : vector<32x32xi32>
    %c0_i32_2 = arith.constant 0 : i32
    %8 = vector.broadcast %c0_i32_2 : i32 to vector<32x32xi32>
    %9 = arith.cmpi slt, %5, %8 : vector<32x32xi32>
    %c0_i32_3 = arith.constant 0 : i32
    %10 = arith.cmpi slt, %3, %c0_i32_3 : i32
    %11 = vector.broadcast %10 : i1 to vector<32x32xi1>
    %12 = vector.broadcast %11 : vector<32x32xi1> to vector<32x32xi1>
    %13 = arith.xori %9, %12 : vector<32x32xi1>
    %14 = arith.andi %13, %7 : vector<32x32xi1>
    %15 = vector.broadcast %3 : i32 to vector<32x32xi32>
    %16 = arith.addi %5, %15 : vector<32x32xi32>
    %17 = arith.select %14, %16, %5 : vector<32x32xi1>, vector<32x32xi32>
    %c1_i32_4 = arith.constant 1 : i32
    %18 = tpu.dynamic_rotate %0 by %c1_i32_4 dim 0 : vector<32x32xf32>, i32 -> vector<32x32xf32>
    %c31_i32 = arith.constant 31 : i32
    %19 = tpu.dynamic_rotate %0 by %c31_i32 dim 0 : vector<32x32xf32>, i32 -> vector<32x32xf32>
    %c30_i32 = arith.constant 30 : i32
    %20 = tpu.dynamic_rotate %0 by %c30_i32 dim 0 : vector<32x32xf32>, i32 -> vector<32x32xf32>
    %c1 = arith.constant 1 : index
    %21 = memref.load %arg2[%c1] : memref<5xf32, #tpu.memory_space<smem>>
    %22 = vector.broadcast %21 : f32 to vector<32x32xf32>
    %23 = arith.mulf %22, %0 : vector<32x32xf32>
    %c1_i32_5 = arith.constant 1 : i32
    %24 = vector.broadcast %c1_i32_5 : i32 to vector<32x32xi32>
    %25 = arith.cmpi sge, %17, %24 : vector<32x32xi32>
    %c0_6 = arith.constant 0 : index
    %26 = memref.load %arg2[%c0_6] : memref<5xf32, #tpu.memory_space<smem>>
    %27 = vector.broadcast %26 : f32 to vector<32x32xf32>
    %28 = arith.mulf %27, %18 : vector<32x32xf32>
    %cst = arith.constant 0.000000e+00 : f32
    %29 = vector.broadcast %cst : f32 to vector<32x32xf32>
    %30 = arith.select %25, %28, %29 : vector<32x32xi1>, vector<32x32xf32>
    %31 = arith.addf %23, %30 : vector<32x32xf32>
    %c6_i32 = arith.constant 6 : i32
    %32 = vector.broadcast %c6_i32 : i32 to vector<32x32xi32>
    %33 = arith.cmpi sle, %17, %32 : vector<32x32xi32>
    %c2 = arith.constant 2 : index
    %34 = memref.load %arg2[%c2] : memref<5xf32, #tpu.memory_space<smem>>
    %35 = vector.broadcast %34 : f32 to vector<32x32xf32>
    %36 = arith.mulf %35, %19 : vector<32x32xf32>
    %cst_7 = arith.constant 0.000000e+00 : f32
    %37 = vector.broadcast %cst_7 : f32 to vector<32x32xf32>
    %38 = arith.select %33, %36, %37 : vector<32x32xi1>, vector<32x32xf32>
    %39 = arith.addf %31, %38 : vector<32x32xf32>
    %c5_i32 = arith.constant 5 : i32
    %40 = vector.broadcast %c5_i32 : i32 to vector<32x32xi32>
    %41 = arith.cmpi sle, %17, %40 : vector<32x32xi32>
    %c3 = arith.constant 3 : index
    %42 = memref.load %arg2[%c3] : memref<5xf32, #tpu.memory_space<smem>>
    %43 = vector.broadcast %42 : f32 to vector<32x32xf32>
    %44 = arith.mulf %43, %20 : vector<32x32xf32>
    %cst_8 = arith.constant 0.000000e+00 : f32
    %45 = vector.broadcast %cst_8 : f32 to vector<32x32xf32>
    %46 = arith.select %41, %44, %45 : vector<32x32xi1>, vector<32x32xf32>
    %47 = arith.addf %39, %46 : vector<32x32xf32>
    %c4 = arith.constant 4 : index
    %48 = memref.load %arg2[%c4] : memref<5xf32, #tpu.memory_space<smem>>
    %49 = vector.broadcast %48 : f32 to vector<32x32xf32>
    %50 = arith.addf %47, %49 : vector<32x32xf32>
    %51 = arith.negf %50 : vector<32x32xf32>
    %52 = math.exp %51 : vector<32x32xf32>
    %cst_9 = arith.constant 1.000000e+00 : f32
    %53 = vector.broadcast %cst_9 : f32 to vector<32x32xf32>
    %54 = arith.addf %53, %52 : vector<32x32xf32>
    %55 = arith.divf %53, %54 : vector<32x32xf32>
    %56 = arith.addf %0, %55 : vector<32x32xf32>
    %c0_10 = arith.constant 0 : index
    %c0_11 = arith.constant 0 : index
    %c0_12 = arith.constant 0 : index
    %57 = vector.load %arg3[%c0_10, %c0_11, %c0_12] : memref<2x1x32xf32, #tpu.memory_space<vmem>>, vector<1x1x32xf32>
    %58 = vector.shape_cast %57 : vector<1x1x32xf32> to vector<1x32xf32>
    %c0_13 = arith.constant 0 : index
    %c0_14 = arith.constant 0 : index
    %c0_15 = arith.constant 0 : index
    %59 = vector.load %arg4[%c0_13, %c0_14, %c0_15] : memref<2x1x32xf32, #tpu.memory_space<vmem>>, vector<1x1x32xf32>
    %60 = vector.shape_cast %59 : vector<1x1x32xf32> to vector<1x32xf32>
    %cst_16 = arith.constant dense<0.000000e+00> : vector<32xf32>
    %61 = vector.multi_reduction <add>, %56, %cst_16 [1] : vector<32x32xf32> to vector<32xf32>
    %62 = vector.shape_cast %61 : vector<32xf32> to vector<32x1xf32>
    %cst_17 = arith.constant 3.200000e+01 : f32
    %63 = vector.broadcast %cst_17 : f32 to vector<32x1xf32>
    %64 = arith.divf %62, %63 : vector<32x1xf32>
    %65 = vector.broadcast %64 : vector<32x1xf32> to vector<32x32xf32>
    %66 = arith.subf %56, %65 : vector<32x32xf32>
    %67 = arith.mulf %66, %66 : vector<32x32xf32>
    %cst_18 = arith.constant dense<0.000000e+00> : vector<32xf32>
    %68 = vector.multi_reduction <add>, %67, %cst_18 [1] : vector<32x32xf32> to vector<32xf32>
    %69 = vector.shape_cast %68 : vector<32xf32> to vector<32x1xf32>
    %cst_19 = arith.constant 3.200000e+01 : f32
    %70 = vector.broadcast %cst_19 : f32 to vector<32x1xf32>
    %71 = arith.divf %69, %70 : vector<32x1xf32>
    %72 = vector.broadcast %64 : vector<32x1xf32> to vector<32x32xf32>
    %73 = arith.subf %56, %72 : vector<32x32xf32>
    %cst_20 = arith.constant 9.99999974E-6 : f32
    %74 = vector.broadcast %cst_20 : f32 to vector<32x1xf32>
    %75 = arith.addf %71, %74 : vector<32x1xf32>
    %76 = math.rsqrt %75 : vector<32x1xf32>
    %77 = vector.broadcast %76 : vector<32x1xf32> to vector<32x32xf32>
    %78 = arith.mulf %73, %77 : vector<32x32xf32>
    %79 = vector.broadcast %58 : vector<1x32xf32> to vector<32x32xf32>
    %80 = arith.mulf %78, %79 : vector<32x32xf32>
    %81 = vector.broadcast %60 : vector<1x32xf32> to vector<32x32xf32>
    %82 = arith.addf %80, %81 : vector<32x32xf32>
    %c0_21 = arith.constant 0 : index
    %c0_22 = arith.constant 0 : index
    %c0_23 = arith.constant 0 : index
    %83 = vector.load %arg5[%c0_21, %c0_22, %c0_23] : memref<2x32x96xbf16, #tpu.memory_space<vmem>>, vector<1x32x96xbf16>
    %84 = vector.shape_cast %83 : vector<1x32x96xbf16> to vector<32x96xbf16>
    %85 = arith.truncf %82 : vector<32x32xf32> to vector<32x32xbf16>
    %cst_24 = arith.constant dense<0.000000e+00> : vector<32x96xf32>
    %86 = tpu.matmul %85, %84, %cst_24 {dimension_numbers = #tpu.dot_dimension_numbers<[1], [0], [0], [1], [0, 0, 1, 1], [], []>} : vector<32x32xbf16>, vector<32x96xbf16>, vector<32x96xf32> -> vector<32x96xf32>
    %87 = arith.truncf %86 : vector<32x96xf32> to vector<32x96xbf16>
    %88 = vector.extract_strided_slice %87 {offsets = [0, 0], sizes = [32, 16], strides = [1, 1]} : vector<32x96xbf16> to vector<32x16xbf16>
    %89 = vector.shape_cast %88 : vector<32x16xbf16> to vector<4x8x16xbf16>
    %90 = vector.extract_strided_slice %87 {offsets = [0, 32], sizes = [32, 16], strides = [1, 1]} : vector<32x96xbf16> to vector<32x16xbf16>
    %91 = vector.shape_cast %90 : vector<32x16xbf16> to vector<4x8x16xbf16>
    %92 = vector.extract_strided_slice %87 {offsets = [0, 64], sizes = [32, 16], strides = [1, 1]} : vector<32x96xbf16> to vector<32x16xbf16>
    %93 = vector.shape_cast %92 : vector<32x16xbf16> to vector<4x8x16xbf16>
    "tpu.trace_start"() <{level = 10 : i32, message = "bid,bjd->bij"}> : () -> ()
    %cst_25 = arith.constant dense<0.000000e+00> : vector<4x8x8xf32>
    %94 = tpu.matmul %89, %91, %cst_25 {dimension_numbers = #tpu.dot_dimension_numbers<[2], [2], [1], [1], [0, 0, 0, 1, 1, 1], [0], [0]>} : vector<4x8x16xbf16>, vector<4x8x16xbf16>, vector<4x8x8xf32> -> vector<4x8x8xf32>
    "tpu.trace_stop"() : () -> ()
    %cst_26 = arith.constant dense<0xFF800000> : vector<4x8xf32>
    %95 = vector.multi_reduction <maximumf>, %94, %cst_26 [2] : vector<4x8x8xf32> to vector<4x8xf32>
    %96 = vector.shape_cast %95 : vector<4x8xf32> to vector<4x8x1xf32>
    %97 = vector.broadcast %96 : vector<4x8x1xf32> to vector<4x8x8xf32>
    %98 = arith.subf %94, %97 : vector<4x8x8xf32>
    %99 = math.exp %98 : vector<4x8x8xf32>
    %cst_27 = arith.constant dense<0.000000e+00> : vector<4x8xf32>
    %100 = vector.multi_reduction <add>, %99, %cst_27 [2] : vector<4x8x8xf32> to vector<4x8xf32>
    %101 = vector.shape_cast %100 : vector<4x8xf32> to vector<4x8x1xf32>
    %102 = tpu.reciprocal %101 {approx = true} : vector<4x8x1xf32> -> vector<4x8x1xf32>
    %103 = vector.broadcast %102 : vector<4x8x1xf32> to vector<4x8x8xf32>
    %104 = arith.mulf %99, %103 : vector<4x8x8xf32>
    %105 = arith.truncf %104 : vector<4x8x8xf32> to vector<4x8x8xbf16>
    "tpu.trace_start"() <{level = 10 : i32, message = "bij,bjd->bid"}> : () -> ()
    %cst_28 = arith.constant dense<0.000000e+00> : vector<4x8x16xf32>
    %106 = tpu.matmul %105, %93, %cst_28 {dimension_numbers = #tpu.dot_dimension_numbers<[2], [1], [1], [2], [0, 0, 0, 1, 1, 2], [0], [0]>} : vector<4x8x8xbf16>, vector<4x8x16xbf16>, vector<4x8x16xf32> -> vector<4x8x16xf32>
    "tpu.trace_stop"() : () -> ()
    %107 = vector.shape_cast %106 : vector<4x8x16xf32> to vector<32x16xf32>
    %108 = vector.extract_strided_slice %87 {offsets = [0, 16], sizes = [32, 16], strides = [1, 1]} : vector<32x96xbf16> to vector<32x16xbf16>
    %109 = vector.shape_cast %108 : vector<32x16xbf16> to vector<4x8x16xbf16>
    %110 = vector.extract_strided_slice %87 {offsets = [0, 48], sizes = [32, 16], strides = [1, 1]} : vector<32x96xbf16> to vector<32x16xbf16>
    %111 = vector.shape_cast %110 : vector<32x16xbf16> to vector<4x8x16xbf16>
    %112 = vector.extract_strided_slice %87 {offsets = [0, 80], sizes = [32, 16], strides = [1, 1]} : vector<32x96xbf16> to vector<32x16xbf16>
    %113 = vector.shape_cast %112 : vector<32x16xbf16> to vector<4x8x16xbf16>
    "tpu.trace_start"() <{level = 10 : i32, message = "bid,bjd->bij"}> : () -> ()
    %cst_29 = arith.constant dense<0.000000e+00> : vector<4x8x8xf32>
    %114 = tpu.matmul %109, %111, %cst_29 {dimension_numbers = #tpu.dot_dimension_numbers<[2], [2], [1], [1], [0, 0, 0, 1, 1, 1], [0], [0]>} : vector<4x8x16xbf16>, vector<4x8x16xbf16>, vector<4x8x8xf32> -> vector<4x8x8xf32>
    "tpu.trace_stop"() : () -> ()
    %cst_30 = arith.constant dense<0xFF800000> : vector<4x8xf32>
    %115 = vector.multi_reduction <maximumf>, %114, %cst_30 [2] : vector<4x8x8xf32> to vector<4x8xf32>
    %116 = vector.shape_cast %115 : vector<4x8xf32> to vector<4x8x1xf32>
    %117 = vector.broadcast %116 : vector<4x8x1xf32> to vector<4x8x8xf32>
    %118 = arith.subf %114, %117 : vector<4x8x8xf32>
    %119 = math.exp %118 : vector<4x8x8xf32>
    %cst_31 = arith.constant dense<0.000000e+00> : vector<4x8xf32>
    %120 = vector.multi_reduction <add>, %119, %cst_31 [2] : vector<4x8x8xf32> to vector<4x8xf32>
    %121 = vector.shape_cast %120 : vector<4x8xf32> to vector<4x8x1xf32>
    %122 = tpu.reciprocal %121 {approx = true} : vector<4x8x1xf32> -> vector<4x8x1xf32>
    %123 = vector.broadcast %122 : vector<4x8x1xf32> to vector<4x8x8xf32>
    %124 = arith.mulf %119, %123 : vector<4x8x8xf32>
    %125 = arith.truncf %124 : vector<4x8x8xf32> to vector<4x8x8xbf16>
    "tpu.trace_start"() <{level = 10 : i32, message = "bij,bjd->bid"}> : () -> ()
    %cst_32 = arith.constant dense<0.000000e+00> : vector<4x8x16xf32>
    %126 = tpu.matmul %125, %113, %cst_32 {dimension_numbers = #tpu.dot_dimension_numbers<[2], [1], [1], [2], [0, 0, 0, 1, 1, 2], [0], [0]>} : vector<4x8x8xbf16>, vector<4x8x16xbf16>, vector<4x8x16xf32> -> vector<4x8x16xf32>
    "tpu.trace_stop"() : () -> ()
    %127 = vector.shape_cast %126 : vector<4x8x16xf32> to vector<32x16xf32>
    %128 = tpu.concatenate %107, %127 in 1 : vector<32x16xf32>, vector<32x16xf32> -> vector<32x32xf32>
    %c0_33 = arith.constant 0 : index
    %c0_34 = arith.constant 0 : index
    %c0_35 = arith.constant 0 : index
    %129 = vector.load %arg6[%c0_33, %c0_34, %c0_35] : memref<2x32x32xbf16, #tpu.memory_space<vmem>>, vector<1x32x32xbf16>
    %130 = vector.shape_cast %129 : vector<1x32x32xbf16> to vector<32x32xbf16>
    %131 = arith.truncf %128 : vector<32x32xf32> to vector<32x32xbf16>
    %cst_36 = arith.constant dense<0.000000e+00> : vector<32x32xf32>
    %132 = tpu.matmul %131, %130, %cst_36 {dimension_numbers = #tpu.dot_dimension_numbers<[1], [0], [0], [1], [0, 0, 1, 1], [], []>} : vector<32x32xbf16>, vector<32x32xbf16>, vector<32x32xf32> -> vector<32x32xf32>
    %133 = arith.addf %56, %132 : vector<32x32xf32>
    %c0_37 = arith.constant 0 : index
    %c0_38 = arith.constant 0 : index
    %c0_39 = arith.constant 0 : index
    %134 = vector.load %arg7[%c0_37, %c0_38, %c0_39] : memref<2x1x32xf32, #tpu.memory_space<vmem>>, vector<1x1x32xf32>
    %135 = vector.shape_cast %134 : vector<1x1x32xf32> to vector<1x32xf32>
    %136 = vector.broadcast %135 : vector<1x32xf32> to vector<32x32xf32>
    %137 = arith.addf %133, %136 : vector<32x32xf32>
    %c0_40 = arith.constant 0 : index
    %c0_41 = arith.constant 0 : index
    %c0_42 = arith.constant 0 : index
    %138 = vector.load %arg8[%c0_40, %c0_41, %c0_42] : memref<2x1x32xf32, #tpu.memory_space<vmem>>, vector<1x1x32xf32>
    %139 = vector.shape_cast %138 : vector<1x1x32xf32> to vector<1x32xf32>
    %c0_43 = arith.constant 0 : index
    %c0_44 = arith.constant 0 : index
    %c0_45 = arith.constant 0 : index
    %140 = vector.load %arg9[%c0_43, %c0_44, %c0_45] : memref<2x1x32xf32, #tpu.memory_space<vmem>>, vector<1x1x32xf32>
    %141 = vector.shape_cast %140 : vector<1x1x32xf32> to vector<1x32xf32>
    %cst_46 = arith.constant dense<0.000000e+00> : vector<32xf32>
    %142 = vector.multi_reduction <add>, %137, %cst_46 [1] : vector<32x32xf32> to vector<32xf32>
    %143 = vector.shape_cast %142 : vector<32xf32> to vector<32x1xf32>
    %cst_47 = arith.constant 3.200000e+01 : f32
    %144 = vector.broadcast %cst_47 : f32 to vector<32x1xf32>
    %145 = arith.divf %143, %144 : vector<32x1xf32>
    %146 = vector.broadcast %145 : vector<32x1xf32> to vector<32x32xf32>
    %147 = arith.subf %137, %146 : vector<32x32xf32>
    %148 = arith.mulf %147, %147 : vector<32x32xf32>
    %cst_48 = arith.constant dense<0.000000e+00> : vector<32xf32>
    %149 = vector.multi_reduction <add>, %148, %cst_48 [1] : vector<32x32xf32> to vector<32xf32>
    %150 = vector.shape_cast %149 : vector<32xf32> to vector<32x1xf32>
    %cst_49 = arith.constant 3.200000e+01 : f32
    %151 = vector.broadcast %cst_49 : f32 to vector<32x1xf32>
    %152 = arith.divf %150, %151 : vector<32x1xf32>
    %153 = vector.broadcast %145 : vector<32x1xf32> to vector<32x32xf32>
    %154 = arith.subf %137, %153 : vector<32x32xf32>
    %cst_50 = arith.constant 9.99999974E-6 : f32
    %155 = vector.broadcast %cst_50 : f32 to vector<32x1xf32>
    %156 = arith.addf %152, %155 : vector<32x1xf32>
    %157 = math.rsqrt %156 : vector<32x1xf32>
    %158 = vector.broadcast %157 : vector<32x1xf32> to vector<32x32xf32>
    %159 = arith.mulf %154, %158 : vector<32x32xf32>
    %160 = vector.broadcast %139 : vector<1x32xf32> to vector<32x32xf32>
    %161 = arith.mulf %159, %160 : vector<32x32xf32>
    %162 = vector.broadcast %141 : vector<1x32xf32> to vector<32x32xf32>
    %163 = arith.addf %161, %162 : vector<32x32xf32>
    %c0_51 = arith.constant 0 : index
    %c0_52 = arith.constant 0 : index
    %c0_53 = arith.constant 0 : index
    %164 = vector.load %arg10[%c0_51, %c0_52, %c0_53] : memref<2x32x64xbf16, #tpu.memory_space<vmem>>, vector<1x32x64xbf16>
    %165 = vector.shape_cast %164 : vector<1x32x64xbf16> to vector<32x64xbf16>
    %166 = arith.truncf %163 : vector<32x32xf32> to vector<32x32xbf16>
    %cst_54 = arith.constant dense<0.000000e+00> : vector<32x64xf32>
    %167 = tpu.matmul %166, %165, %cst_54 {dimension_numbers = #tpu.dot_dimension_numbers<[1], [0], [0], [1], [0, 0, 1, 1], [], []>} : vector<32x32xbf16>, vector<32x64xbf16>, vector<32x64xf32> -> vector<32x64xf32>
    %c0_55 = arith.constant 0 : index
    %c0_56 = arith.constant 0 : index
    %c0_57 = arith.constant 0 : index
    %168 = vector.load %arg11[%c0_55, %c0_56, %c0_57] : memref<2x1x64xf32, #tpu.memory_space<vmem>>, vector<1x1x64xf32>
    %169 = vector.shape_cast %168 : vector<1x1x64xf32> to vector<1x64xf32>
    %170 = vector.broadcast %169 : vector<1x64xf32> to vector<32x64xf32>
    %171 = arith.addf %167, %170 : vector<32x64xf32>
    %cst_58 = arith.constant 5.000000e-01 : f32
    %172 = vector.broadcast %cst_58 : f32 to vector<32x64xf32>
    %173 = arith.mulf %172, %171 : vector<32x64xf32>
    %cst_59 = arith.constant 0.707106769 : f32
    %174 = vector.broadcast %cst_59 : f32 to vector<32x64xf32>
    %175 = arith.mulf %171, %174 : vector<32x64xf32>
    %176 = math.erf %175 : vector<32x64xf32>
    %cst_60 = arith.constant 1.000000e+00 : f32
    %177 = vector.broadcast %cst_60 : f32 to vector<32x64xf32>
    %178 = arith.addf %177, %176 : vector<32x64xf32>
    %179 = arith.mulf %173, %178 : vector<32x64xf32>
    %c0_61 = arith.constant 0 : index
    %c0_62 = arith.constant 0 : index
    %c0_63 = arith.constant 0 : index
    %180 = vector.load %arg12[%c0_61, %c0_62, %c0_63] : memref<2x64x32xbf16, #tpu.memory_space<vmem>>, vector<1x64x32xbf16>
    %181 = vector.shape_cast %180 : vector<1x64x32xbf16> to vector<64x32xbf16>
    %182 = arith.truncf %179 : vector<32x64xf32> to vector<32x64xbf16>
    %cst_64 = arith.constant dense<0.000000e+00> : vector<32x32xf32>
    %183 = tpu.matmul %182, %181, %cst_64 {dimension_numbers = #tpu.dot_dimension_numbers<[1], [0], [0], [1], [0, 0, 1, 1], [], []>} : vector<32x64xbf16>, vector<64x32xbf16>, vector<32x32xf32> -> vector<32x32xf32>
    %184 = arith.addf %137, %183 : vector<32x32xf32>
    %c0_65 = arith.constant 0 : index
    %c0_66 = arith.constant 0 : index
    %c0_67 = arith.constant 0 : index
    %185 = vector.load %arg13[%c0_65, %c0_66, %c0_67] : memref<2x1x32xf32, #tpu.memory_space<vmem>>, vector<1x1x32xf32>
    %186 = vector.shape_cast %185 : vector<1x1x32xf32> to vector<1x32xf32>
    %187 = vector.broadcast %186 : vector<1x32xf32> to vector<32x32xf32>
    %188 = arith.addf %184, %187 : vector<32x32xf32>
    %c1_68 = arith.constant 1 : index
    %c0_69 = arith.constant 0 : index
    %c0_70 = arith.constant 0 : index
    %189 = vector.load %arg3[%c1_68, %c0_69, %c0_70] : memref<2x1x32xf32, #tpu.memory_space<vmem>>, vector<1x1x32xf32>
    %190 = vector.shape_cast %189 : vector<1x1x32xf32> to vector<1x32xf32>
    %c1_71 = arith.constant 1 : index
    %c0_72 = arith.constant 0 : index
    %c0_73 = arith.constant 0 : index
    %191 = vector.load %arg4[%c1_71, %c0_72, %c0_73] : memref<2x1x32xf32, #tpu.memory_space<vmem>>, vector<1x1x32xf32>
    %192 = vector.shape_cast %191 : vector<1x1x32xf32> to vector<1x32xf32>
    %cst_74 = arith.constant dense<0.000000e+00> : vector<32xf32>
    %193 = vector.multi_reduction <add>, %188, %cst_74 [1] : vector<32x32xf32> to vector<32xf32>
    %194 = vector.shape_cast %193 : vector<32xf32> to vector<32x1xf32>
    %cst_75 = arith.constant 3.200000e+01 : f32
    %195 = vector.broadcast %cst_75 : f32 to vector<32x1xf32>
    %196 = arith.divf %194, %195 : vector<32x1xf32>
    %197 = vector.broadcast %196 : vector<32x1xf32> to vector<32x32xf32>
    %198 = arith.subf %188, %197 : vector<32x32xf32>
    %199 = arith.mulf %198, %198 : vector<32x32xf32>
    %cst_76 = arith.constant dense<0.000000e+00> : vector<32xf32>
    %200 = vector.multi_reduction <add>, %199, %cst_76 [1] : vector<32x32xf32> to vector<32xf32>
    %201 = vector.shape_cast %200 : vector<32xf32> to vector<32x1xf32>
    %cst_77 = arith.constant 3.200000e+01 : f32
    %202 = vector.broadcast %cst_77 : f32 to vector<32x1xf32>
    %203 = arith.divf %201, %202 : vector<32x1xf32>
    %204 = vector.broadcast %196 : vector<32x1xf32> to vector<32x32xf32>
    %205 = arith.subf %188, %204 : vector<32x32xf32>
    %cst_78 = arith.constant 9.99999974E-6 : f32
    %206 = vector.broadcast %cst_78 : f32 to vector<32x1xf32>
    %207 = arith.addf %203, %206 : vector<32x1xf32>
    %208 = math.rsqrt %207 : vector<32x1xf32>
    %209 = vector.broadcast %208 : vector<32x1xf32> to vector<32x32xf32>
    %210 = arith.mulf %205, %209 : vector<32x32xf32>
    %211 = vector.broadcast %190 : vector<1x32xf32> to vector<32x32xf32>
    %212 = arith.mulf %210, %211 : vector<32x32xf32>
    %213 = vector.broadcast %192 : vector<1x32xf32> to vector<32x32xf32>
    %214 = arith.addf %212, %213 : vector<32x32xf32>
    %c1_79 = arith.constant 1 : index
    %c0_80 = arith.constant 0 : index
    %c0_81 = arith.constant 0 : index
    %215 = vector.load %arg5[%c1_79, %c0_80, %c0_81] : memref<2x32x96xbf16, #tpu.memory_space<vmem>>, vector<1x32x96xbf16>
    %216 = vector.shape_cast %215 : vector<1x32x96xbf16> to vector<32x96xbf16>
    %217 = arith.truncf %214 : vector<32x32xf32> to vector<32x32xbf16>
    %cst_82 = arith.constant dense<0.000000e+00> : vector<32x96xf32>
    %218 = tpu.matmul %217, %216, %cst_82 {dimension_numbers = #tpu.dot_dimension_numbers<[1], [0], [0], [1], [0, 0, 1, 1], [], []>} : vector<32x32xbf16>, vector<32x96xbf16>, vector<32x96xf32> -> vector<32x96xf32>
    %219 = arith.truncf %218 : vector<32x96xf32> to vector<32x96xbf16>
    %220 = vector.extract_strided_slice %219 {offsets = [0, 0], sizes = [32, 16], strides = [1, 1]} : vector<32x96xbf16> to vector<32x16xbf16>
    %221 = vector.shape_cast %220 : vector<32x16xbf16> to vector<4x8x16xbf16>
    %222 = vector.extract_strided_slice %219 {offsets = [0, 32], sizes = [32, 16], strides = [1, 1]} : vector<32x96xbf16> to vector<32x16xbf16>
    %223 = vector.shape_cast %222 : vector<32x16xbf16> to vector<4x8x16xbf16>
    %224 = vector.extract_strided_slice %219 {offsets = [0, 64], sizes = [32, 16], strides = [1, 1]} : vector<32x96xbf16> to vector<32x16xbf16>
    %225 = vector.shape_cast %224 : vector<32x16xbf16> to vector<4x8x16xbf16>
    "tpu.trace_start"() <{level = 10 : i32, message = "bid,bjd->bij"}> : () -> ()
    %cst_83 = arith.constant dense<0.000000e+00> : vector<4x8x8xf32>
    %226 = tpu.matmul %221, %223, %cst_83 {dimension_numbers = #tpu.dot_dimension_numbers<[2], [2], [1], [1], [0, 0, 0, 1, 1, 1], [0], [0]>} : vector<4x8x16xbf16>, vector<4x8x16xbf16>, vector<4x8x8xf32> -> vector<4x8x8xf32>
    "tpu.trace_stop"() : () -> ()
    %cst_84 = arith.constant dense<0xFF800000> : vector<4x8xf32>
    %227 = vector.multi_reduction <maximumf>, %226, %cst_84 [2] : vector<4x8x8xf32> to vector<4x8xf32>
    %228 = vector.shape_cast %227 : vector<4x8xf32> to vector<4x8x1xf32>
    %229 = vector.broadcast %228 : vector<4x8x1xf32> to vector<4x8x8xf32>
    %230 = arith.subf %226, %229 : vector<4x8x8xf32>
    %231 = math.exp %230 : vector<4x8x8xf32>
    %cst_85 = arith.constant dense<0.000000e+00> : vector<4x8xf32>
    %232 = vector.multi_reduction <add>, %231, %cst_85 [2] : vector<4x8x8xf32> to vector<4x8xf32>
    %233 = vector.shape_cast %232 : vector<4x8xf32> to vector<4x8x1xf32>
    %234 = tpu.reciprocal %233 {approx = true} : vector<4x8x1xf32> -> vector<4x8x1xf32>
    %235 = vector.broadcast %234 : vector<4x8x1xf32> to vector<4x8x8xf32>
    %236 = arith.mulf %231, %235 : vector<4x8x8xf32>
    %237 = arith.truncf %236 : vector<4x8x8xf32> to vector<4x8x8xbf16>
    "tpu.trace_start"() <{level = 10 : i32, message = "bij,bjd->bid"}> : () -> ()
    %cst_86 = arith.constant dense<0.000000e+00> : vector<4x8x16xf32>
    %238 = tpu.matmul %237, %225, %cst_86 {dimension_numbers = #tpu.dot_dimension_numbers<[2], [1], [1], [2], [0, 0, 0, 1, 1, 2], [0], [0]>} : vector<4x8x8xbf16>, vector<4x8x16xbf16>, vector<4x8x16xf32> -> vector<4x8x16xf32>
    "tpu.trace_stop"() : () -> ()
    %239 = vector.shape_cast %238 : vector<4x8x16xf32> to vector<32x16xf32>
    %240 = vector.extract_strided_slice %219 {offsets = [0, 16], sizes = [32, 16], strides = [1, 1]} : vector<32x96xbf16> to vector<32x16xbf16>
    %241 = vector.shape_cast %240 : vector<32x16xbf16> to vector<4x8x16xbf16>
    %242 = vector.extract_strided_slice %219 {offsets = [0, 48], sizes = [32, 16], strides = [1, 1]} : vector<32x96xbf16> to vector<32x16xbf16>
    %243 = vector.shape_cast %242 : vector<32x16xbf16> to vector<4x8x16xbf16>
    %244 = vector.extract_strided_slice %219 {offsets = [0, 80], sizes = [32, 16], strides = [1, 1]} : vector<32x96xbf16> to vector<32x16xbf16>
    %245 = vector.shape_cast %244 : vector<32x16xbf16> to vector<4x8x16xbf16>
    "tpu.trace_start"() <{level = 10 : i32, message = "bid,bjd->bij"}> : () -> ()
    %cst_87 = arith.constant dense<0.000000e+00> : vector<4x8x8xf32>
    %246 = tpu.matmul %241, %243, %cst_87 {dimension_numbers = #tpu.dot_dimension_numbers<[2], [2], [1], [1], [0, 0, 0, 1, 1, 1], [0], [0]>} : vector<4x8x16xbf16>, vector<4x8x16xbf16>, vector<4x8x8xf32> -> vector<4x8x8xf32>
    "tpu.trace_stop"() : () -> ()
    %cst_88 = arith.constant dense<0xFF800000> : vector<4x8xf32>
    %247 = vector.multi_reduction <maximumf>, %246, %cst_88 [2] : vector<4x8x8xf32> to vector<4x8xf32>
    %248 = vector.shape_cast %247 : vector<4x8xf32> to vector<4x8x1xf32>
    %249 = vector.broadcast %248 : vector<4x8x1xf32> to vector<4x8x8xf32>
    %250 = arith.subf %246, %249 : vector<4x8x8xf32>
    %251 = math.exp %250 : vector<4x8x8xf32>
    %cst_89 = arith.constant dense<0.000000e+00> : vector<4x8xf32>
    %252 = vector.multi_reduction <add>, %251, %cst_89 [2] : vector<4x8x8xf32> to vector<4x8xf32>
    %253 = vector.shape_cast %252 : vector<4x8xf32> to vector<4x8x1xf32>
    %254 = tpu.reciprocal %253 {approx = true} : vector<4x8x1xf32> -> vector<4x8x1xf32>
    %255 = vector.broadcast %254 : vector<4x8x1xf32> to vector<4x8x8xf32>
    %256 = arith.mulf %251, %255 : vector<4x8x8xf32>
    %257 = arith.truncf %256 : vector<4x8x8xf32> to vector<4x8x8xbf16>
    "tpu.trace_start"() <{level = 10 : i32, message = "bij,bjd->bid"}> : () -> ()
    %cst_90 = arith.constant dense<0.000000e+00> : vector<4x8x16xf32>
    %258 = tpu.matmul %257, %245, %cst_90 {dimension_numbers = #tpu.dot_dimension_numbers<[2], [1], [1], [2], [0, 0, 0, 1, 1, 2], [0], [0]>} : vector<4x8x8xbf16>, vector<4x8x16xbf16>, vector<4x8x16xf32> -> vector<4x8x16xf32>
    "tpu.trace_stop"() : () -> ()
    %259 = vector.shape_cast %258 : vector<4x8x16xf32> to vector<32x16xf32>
    %260 = tpu.concatenate %239, %259 in 1 : vector<32x16xf32>, vector<32x16xf32> -> vector<32x32xf32>
    %c1_91 = arith.constant 1 : index
    %c0_92 = arith.constant 0 : index
    %c0_93 = arith.constant 0 : index
    %261 = vector.load %arg6[%c1_91, %c0_92, %c0_93] : memref<2x32x32xbf16, #tpu.memory_space<vmem>>, vector<1x32x32xbf16>
    %262 = vector.shape_cast %261 : vector<1x32x32xbf16> to vector<32x32xbf16>
    %263 = arith.truncf %260 : vector<32x32xf32> to vector<32x32xbf16>
    %cst_94 = arith.constant dense<0.000000e+00> : vector<32x32xf32>
    %264 = tpu.matmul %263, %262, %cst_94 {dimension_numbers = #tpu.dot_dimension_numbers<[1], [0], [0], [1], [0, 0, 1, 1], [], []>} : vector<32x32xbf16>, vector<32x32xbf16>, vector<32x32xf32> -> vector<32x32xf32>
    %265 = arith.addf %188, %264 : vector<32x32xf32>
    %c1_95 = arith.constant 1 : index
    %c0_96 = arith.constant 0 : index
    %c0_97 = arith.constant 0 : index
    %266 = vector.load %arg7[%c1_95, %c0_96, %c0_97] : memref<2x1x32xf32, #tpu.memory_space<vmem>>, vector<1x1x32xf32>
    %267 = vector.shape_cast %266 : vector<1x1x32xf32> to vector<1x32xf32>
    %268 = vector.broadcast %267 : vector<1x32xf32> to vector<32x32xf32>
    %269 = arith.addf %265, %268 : vector<32x32xf32>
    %c1_98 = arith.constant 1 : index
    %c0_99 = arith.constant 0 : index
    %c0_100 = arith.constant 0 : index
    %270 = vector.load %arg8[%c1_98, %c0_99, %c0_100] : memref<2x1x32xf32, #tpu.memory_space<vmem>>, vector<1x1x32xf32>
    %271 = vector.shape_cast %270 : vector<1x1x32xf32> to vector<1x32xf32>
    %c1_101 = arith.constant 1 : index
    %c0_102 = arith.constant 0 : index
    %c0_103 = arith.constant 0 : index
    %272 = vector.load %arg9[%c1_101, %c0_102, %c0_103] : memref<2x1x32xf32, #tpu.memory_space<vmem>>, vector<1x1x32xf32>
    %273 = vector.shape_cast %272 : vector<1x1x32xf32> to vector<1x32xf32>
    %cst_104 = arith.constant dense<0.000000e+00> : vector<32xf32>
    %274 = vector.multi_reduction <add>, %269, %cst_104 [1] : vector<32x32xf32> to vector<32xf32>
    %275 = vector.shape_cast %274 : vector<32xf32> to vector<32x1xf32>
    %cst_105 = arith.constant 3.200000e+01 : f32
    %276 = vector.broadcast %cst_105 : f32 to vector<32x1xf32>
    %277 = arith.divf %275, %276 : vector<32x1xf32>
    %278 = vector.broadcast %277 : vector<32x1xf32> to vector<32x32xf32>
    %279 = arith.subf %269, %278 : vector<32x32xf32>
    %280 = arith.mulf %279, %279 : vector<32x32xf32>
    %cst_106 = arith.constant dense<0.000000e+00> : vector<32xf32>
    %281 = vector.multi_reduction <add>, %280, %cst_106 [1] : vector<32x32xf32> to vector<32xf32>
    %282 = vector.shape_cast %281 : vector<32xf32> to vector<32x1xf32>
    %cst_107 = arith.constant 3.200000e+01 : f32
    %283 = vector.broadcast %cst_107 : f32 to vector<32x1xf32>
    %284 = arith.divf %282, %283 : vector<32x1xf32>
    %285 = vector.broadcast %277 : vector<32x1xf32> to vector<32x32xf32>
    %286 = arith.subf %269, %285 : vector<32x32xf32>
    %cst_108 = arith.constant 9.99999974E-6 : f32
    %287 = vector.broadcast %cst_108 : f32 to vector<32x1xf32>
    %288 = arith.addf %284, %287 : vector<32x1xf32>
    %289 = math.rsqrt %288 : vector<32x1xf32>
    %290 = vector.broadcast %289 : vector<32x1xf32> to vector<32x32xf32>
    %291 = arith.mulf %286, %290 : vector<32x32xf32>
    %292 = vector.broadcast %271 : vector<1x32xf32> to vector<32x32xf32>
    %293 = arith.mulf %291, %292 : vector<32x32xf32>
    %294 = vector.broadcast %273 : vector<1x32xf32> to vector<32x32xf32>
    %295 = arith.addf %293, %294 : vector<32x32xf32>
    %c1_109 = arith.constant 1 : index
    %c0_110 = arith.constant 0 : index
    %c0_111 = arith.constant 0 : index
    %296 = vector.load %arg10[%c1_109, %c0_110, %c0_111] : memref<2x32x64xbf16, #tpu.memory_space<vmem>>, vector<1x32x64xbf16>
    %297 = vector.shape_cast %296 : vector<1x32x64xbf16> to vector<32x64xbf16>
    %298 = arith.truncf %295 : vector<32x32xf32> to vector<32x32xbf16>
    %cst_112 = arith.constant dense<0.000000e+00> : vector<32x64xf32>
    %299 = tpu.matmul %298, %297, %cst_112 {dimension_numbers = #tpu.dot_dimension_numbers<[1], [0], [0], [1], [0, 0, 1, 1], [], []>} : vector<32x32xbf16>, vector<32x64xbf16>, vector<32x64xf32> -> vector<32x64xf32>
    %c1_113 = arith.constant 1 : index
    %c0_114 = arith.constant 0 : index
    %c0_115 = arith.constant 0 : index
    %300 = vector.load %arg11[%c1_113, %c0_114, %c0_115] : memref<2x1x64xf32, #tpu.memory_space<vmem>>, vector<1x1x64xf32>
    %301 = vector.shape_cast %300 : vector<1x1x64xf32> to vector<1x64xf32>
    %302 = vector.broadcast %301 : vector<1x64xf32> to vector<32x64xf32>
    %303 = arith.addf %299, %302 : vector<32x64xf32>
    %cst_116 = arith.constant 5.000000e-01 : f32
    %304 = vector.broadcast %cst_116 : f32 to vector<32x64xf32>
    %305 = arith.mulf %304, %303 : vector<32x64xf32>
    %cst_117 = arith.constant 0.707106769 : f32
    %306 = vector.broadcast %cst_117 : f32 to vector<32x64xf32>
    %307 = arith.mulf %303, %306 : vector<32x64xf32>
    %308 = math.erf %307 : vector<32x64xf32>
    %cst_118 = arith.constant 1.000000e+00 : f32
    %309 = vector.broadcast %cst_118 : f32 to vector<32x64xf32>
    %310 = arith.addf %309, %308 : vector<32x64xf32>
    %311 = arith.mulf %305, %310 : vector<32x64xf32>
    %c1_119 = arith.constant 1 : index
    %c0_120 = arith.constant 0 : index
    %c0_121 = arith.constant 0 : index
    %312 = vector.load %arg12[%c1_119, %c0_120, %c0_121] : memref<2x64x32xbf16, #tpu.memory_space<vmem>>, vector<1x64x32xbf16>
    %313 = vector.shape_cast %312 : vector<1x64x32xbf16> to vector<64x32xbf16>
    %314 = arith.truncf %311 : vector<32x64xf32> to vector<32x64xbf16>
    %cst_122 = arith.constant dense<0.000000e+00> : vector<32x32xf32>
    %315 = tpu.matmul %314, %313, %cst_122 {dimension_numbers = #tpu.dot_dimension_numbers<[1], [0], [0], [1], [0, 0, 1, 1], [], []>} : vector<32x64xbf16>, vector<64x32xbf16>, vector<32x32xf32> -> vector<32x32xf32>
    %316 = arith.addf %269, %315 : vector<32x32xf32>
    %c1_123 = arith.constant 1 : index
    %c0_124 = arith.constant 0 : index
    %c0_125 = arith.constant 0 : index
    %317 = vector.load %arg13[%c1_123, %c0_124, %c0_125] : memref<2x1x32xf32, #tpu.memory_space<vmem>>, vector<1x1x32xf32>
    %318 = vector.shape_cast %317 : vector<1x1x32xf32> to vector<1x32xf32>
    %319 = vector.broadcast %318 : vector<1x32xf32> to vector<32x32xf32>
    %320 = arith.addf %316, %319 : vector<32x32xf32>
    %c0_126 = arith.constant 0 : index
    %c0_127 = arith.constant 0 : index
    %321 = vector.load %arg14[%c0_126, %c0_127] : memref<32x3xbf16, #tpu.memory_space<vmem>>, vector<32x3xbf16>
    %322 = arith.truncf %320 : vector<32x32xf32> to vector<32x32xbf16>
    %cst_128 = arith.constant dense<0.000000e+00> : vector<32x3xf32>
    %323 = tpu.matmul %322, %321, %cst_128 {dimension_numbers = #tpu.dot_dimension_numbers<[1], [0], [0], [1], [0, 0, 1, 1], [], []>} : vector<32x32xbf16>, vector<32x3xbf16>, vector<32x3xf32> -> vector<32x3xf32>
    %c0_129 = arith.constant 0 : index
    %c0_130 = arith.constant 0 : index
    %324 = vector.load %arg15[%c0_129, %c0_130] : memref<1x3xf32, #tpu.memory_space<vmem>>, vector<1x3xf32>
    %325 = vector.broadcast %324 : vector<1x3xf32> to vector<32x3xf32>
    %326 = arith.addf %323, %325 : vector<32x3xf32>
    %c0_131 = arith.constant 0 : index
    %c0_132 = arith.constant 0 : index
    %327 = vector.load %arg16[%c0_131, %c0_132] : memref<32x3xf32, #tpu.memory_space<vmem>>, vector<32x3xf32>
    tpu.vector_store %arg16[%c0_131, %c0_132], %326 {strides = array<i32>} : memref<32x3xf32, #tpu.memory_space<vmem>>, vector<32x3xf32>,
    return
  }
  func.func @transform_0(%arg0: i32) -> (i32, i32) {
    %c0_i32 = arith.constant 0 : i32
    %c0_i32_0 = arith.constant 0 : i32
    return %arg0, %c0_i32 : i32, i32
  }
  func.func @transform_1(%arg0: i32) -> i32 {
    %c0_i32 = arith.constant 0 : i32
    %c0_i32_0 = arith.constant 0 : i32
    return %c0_i32 : i32
  }
  func.func @transform_2(%arg0: i32) -> (i32, i32, i32) {
    %c0_i32 = arith.constant 0 : i32
    %c0_i32_0 = arith.constant 0 : i32
    %c0_i32_1 = arith.constant 0 : i32
    %c0_i32_2 = arith.constant 0 : i32
    return %c0_i32, %c0_i32_0, %c0_i32_1 : i32, i32, i32
  }
  func.func @transform_3(%arg0: i32) -> (i32, i32, i32) {
    %c0_i32 = arith.constant 0 : i32
    %c0_i32_0 = arith.constant 0 : i32
    %c0_i32_1 = arith.constant 0 : i32
    %c0_i32_2 = arith.constant 0 : i32
    return %c0_i32, %c0_i32_0, %c0_i32_1 : i32, i32, i32
  }
  func.func @transform_4(%arg0: i32) -> (i32, i32, i32) {
    %c0_i32 = arith.constant 0 : i32
    %c0_i32_0 = arith.constant 0 : i32
    %c0_i32_1 = arith.constant 0 : i32
    %c0_i32_2 = arith.constant 0 : i32
    return %c0_i32, %c0_i32_0, %c0_i32_1 : i32, i32, i32
  }
  func.func @transform_5(%arg0: i32) -> (i32, i32, i32) {
    %c0_i32 = arith.constant 0 : i32
    %c0_i32_0 = arith.constant 0 : i32
    %c0_i32_1 = arith.constant 0 : i32
    %c0_i32_2 = arith.constant 0 : i32
    return %c0_i32, %c0_i32_0, %c0_i32_1 : i32, i32, i32
  }
  func.func @transform_6(%arg0: i32) -> (i32, i32, i32) {
    %c0_i32 = arith.constant 0 : i32
    %c0_i32_0 = arith.constant 0 : i32
    %c0_i32_1 = arith.constant 0 : i32
    %c0_i32_2 = arith.constant 0 : i32
    return %c0_i32, %c0_i32_0, %c0_i32_1 : i32, i32, i32
  }
  func.func @transform_7(%arg0: i32) -> (i32, i32, i32) {
    %c0_i32 = arith.constant 0 : i32
    %c0_i32_0 = arith.constant 0 : i32
    %c0_i32_1 = arith.constant 0 : i32
    %c0_i32_2 = arith.constant 0 : i32
    return %c0_i32, %c0_i32_0, %c0_i32_1 : i32, i32, i32
  }
  func.func @transform_8(%arg0: i32) -> (i32, i32, i32) {
    %c0_i32 = arith.constant 0 : i32
    %c0_i32_0 = arith.constant 0 : i32
    %c0_i32_1 = arith.constant 0 : i32
    %c0_i32_2 = arith.constant 0 : i32
    return %c0_i32, %c0_i32_0, %c0_i32_1 : i32, i32, i32
  }
  func.func @transform_9(%arg0: i32) -> (i32, i32, i32) {
    %c0_i32 = arith.constant 0 : i32
    %c0_i32_0 = arith.constant 0 : i32
    %c0_i32_1 = arith.constant 0 : i32
    %c0_i32_2 = arith.constant 0 : i32
    return %c0_i32, %c0_i32_0, %c0_i32_1 : i32, i32, i32
  }
  func.func @transform_10(%arg0: i32) -> (i32, i32, i32) {
    %c0_i32 = arith.constant 0 : i32
    %c0_i32_0 = arith.constant 0 : i32
    %c0_i32_1 = arith.constant 0 : i32
    %c0_i32_2 = arith.constant 0 : i32
    return %c0_i32, %c0_i32_0, %c0_i32_1 : i32, i32, i32
  }
  func.func @transform_11(%arg0: i32) -> (i32, i32, i32) {
    %c0_i32 = arith.constant 0 : i32
    %c0_i32_0 = arith.constant 0 : i32
    %c0_i32_1 = arith.constant 0 : i32
    %c0_i32_2 = arith.constant 0 : i32
    return %c0_i32, %c0_i32_0, %c0_i32_1 : i32, i32, i32
  }
  func.func @transform_12(%arg0: i32) -> (i32, i32, i32) {
    %c0_i32 = arith.constant 0 : i32
    %c0_i32_0 = arith.constant 0 : i32
    %c0_i32_1 = arith.constant 0 : i32
    %c0_i32_2 = arith.constant 0 : i32
    return %c0_i32, %c0_i32_0, %c0_i32_1 : i32, i32, i32
  }
  func.func @transform_13(%arg0: i32) -> (i32, i32) {
    %c0_i32 = arith.constant 0 : i32
    %c0_i32_0 = arith.constant 0 : i32
    %c0_i32_1 = arith.constant 0 : i32
    return %c0_i32, %c0_i32_0 : i32, i32
  }
  func.func @transform_14(%arg0: i32) -> (i32, i32) {
    %c0_i32 = arith.constant 0 : i32
    %c0_i32_0 = arith.constant 0 : i32
    %c0_i32_1 = arith.constant 0 : i32
    return %c0_i32, %c0_i32_0 : i32, i32
  }
  func.func @transform_15(%arg0: i32) -> (i32, i32) {
    %c0_i32 = arith.constant 0 : i32
    %c0_i32_0 = arith.constant 0 : i32
    return %arg0, %c0_i32 : i32, i32
  }
}

</mosaic_0001>

<bundles_post_ra>
// kernel: ocet_forward.1
= control target key start
LH: loop header
LB: loop body
LE: loop exit
PB: predicated region body
PF: predicated region fallthrough
CT: control target
= control target key end

     0   :  { %20 = vsyncpa [#allocation3], 0  ;;  %s4535_s18 = smov 0   ;;  %s5243_s0 = inlined_call_operand.vmem [shape: f32[64,32], index: 0, kind: input, shape index: {}]   ;;  %s5244_s1 = inlined_call_operand.vmem [shape: f32[5], index: 1, kind: input, shape index: {}]   ;;  %s5245_s2 = inlined_call_operand.vmem [shape: f32[2,1,32], index: 2, kind: input, shape index: {}]   ;;  %s5246_s3 = inlined_call_operand.vmem [shape: f32[2,1,32], index: 3, kind: input, shape index: {}]   ;;  %s5247_s4 = inlined_call_operand.vmem [shape: bf16[2,32,96], index: 4, kind: input, shape index: {}]   ;;  %s5248_s5 = inlined_call_operand.vmem [shape: bf16[2,32,32], index: 5, kind: input, shape index: {}]   ;;  %s5249_s6 = inlined_call_operand.vmem [shape: f32[2,1,32], index: 6, kind: input, shape index: {}]   ;;  %s5250_s7 = inlined_call_operand.vmem [shape: f32[2,1,32], index: 7, kind: input, shape index: {}]   ;;  %s5251_s8 = inlined_call_operand.vmem [shape: f32[2,1,32], index: 8, kind: input, shape index: {}]   ;;  %s5252_s9 = inlined_call_operand.vmem [shape: bf16[2,32,64], index: 9, kind: input, shape index: {}]   ;;  %s5253_s10 = inlined_call_operand.vmem [shape: f32[2,1,64], index: 10, kind: input, shape index: {}]   ;;  %s5254_s11 = inlined_call_operand.vmem [shape: bf16[2,64,32], index: 11, kind: input, shape index: {}]   ;;  %s5255_s12 = inlined_call_operand.vmem [shape: f32[2,1,32], index: 12, kind: input, shape index: {}]   ;;  %s5256_s13 = inlined_call_operand.vmem [shape: bf16[32,3], index: 13, kind: input, shape index: {}]   ;;  %s5257_s14 = inlined_call_operand.vmem [shape: f32[1,3], index: 14, kind: input, shape index: {}]   ;;  %s5258_s15 = inlined_call_operand.vmem [shape: f32[64,3], index: 15, kind: output, shape index: {}]  }
   0x1 LB: > { %s3695_s19 = sadd.s32 4294967295, %s4444_s18   ;;  %p3697_p0 = scmp.ge.s32.totalorder %s4444_s18, 1  ;;  %s4444_s18 = sphi %s4535_s18, %s26_s18  }
   0x2   : > { %p377_p1 = scmp.lt.s32.totalorder %s4444_s18, 3  ;;  %s390_s22 = sshll.u32 %s5244_s1, 4  ;;  %s391_s22 = int_to_ptr.vmem [resolvable:$true] %s390_s22 }
   0x3   : > { %p4550_p3 = scmp.eq.s32.totalorder %s3695_s19, 0  ;;  %s4419_s25 = scalar_lea.vmem %s391_s22, 16 }
   0x4   : > { %p4546_p2 = pnand %p3697_p0, %p377_p1  ;;  %p4420_p6 = scmp.ne.s32.totalorder %s391_s22, %s4419_s25 }
   0x5   : > { %p4427_p10 = scmp.lt.s32.totalorder %s391_s22, %s391_s22  ;;  %p4428_p11 = scmp.lt.s32.totalorder %s4419_s25, %s4419_s25 }
   0x6   : > { %p4226_p4 = pneg %p4546_p2 }
   0x7   : > { %p4429_p12 = por %p4428_p11, %p4427_p10 }
   0x8   : > { %p4227_p5 = pnand %p4550_p3, %p4226_p4 }
   0xa   : > { %p4421_p7 = pneg %p4227_p5 }
   0xc   : > { %p4422_p8 = pnand %p4421_p7, %p4420_p6 }
   0xe   : > { %p4423_p9 = pneg %p4422_p8 }
  0x10   : > { %p4430_p13 = pnand %p4429_p12, %p4423_p9 }
  0x12   : > { %4433 = shalt.err (!%p4430_p13)
}
  0x13   : > { %s4446_s26 = smov [#allocation2]   ;;  %451 = sbr.rel (%p4546_p2) target bundleno = 6636 (0x19ec), region = 80 }
  0x14   : > { %4229 = dma.vmem_to_smem (!%p4227_p5), %s391_s22, 16, %s4446_s26, [#allocation3]  }
  0x1a   : > { %4439 = dma.done.wait (%p4550_p3), [#allocation3], 16  }
  0x1b   : > { %4441 = vsyncadd (%p4550_p3), [#allocation3], 4294967280 }
  0x1c   : > { %457 = sfence }
  0x1d   : > { %s3702_s27 = sshll.u32 %s3695_s19, 2  ;;  %v517_v0 = vlaneseq  ;;  %s3706_s28 = sld [smem:[#allocation2 + $0x1]]  ;;  %vm693_vm15 = vcmask 261120  }
  0x1e   : > { %p501_p0 = scmp.lt.s32.totalorder %s3702_s27, 7  ;;  %s607_s29 = sld [smem:[#allocation2]] }
  0x1f   : > { %v4564_v1 = vshrl.u32 %v517_v0, 7  ;;  %s4566_s30 = sld [smem:[#allocation2 + $0x2]]  ;;  %s4568_s16 = sld [smem:[#allocation2 + $0x3]] }
  0x20   : > { %s5267_s27 = smov (!%p501_p0, %s3702_s27), 7  ;;  %s4576_s17 = sld [smem:[#allocation2 + $0x4]] }
  0x21   : > { %v519_v2 = vadd.s32 8, %v4564_v1  ;;  %v521_v3 = vadd.s32 24, %v4564_v1  ;;  %v526_v4 = vand.u32 7, %v4564_v1  ;;  %vm574_vm0 = vcmp.lt.s32.totalorder %v4564_v1, 1  ;;  %s5259_s19 = sshll.u32 %s5267_s27, 3  ;;  %s4450_s20 = smov 64  }
  0x22   : > { %vm583_vm1 = vcmp.lt.s32.totalorder %v4564_v1, 7  ;;  %vm592_vm2 = vcmp.lt.s32.totalorder %v4564_v1, 6  ;;  %v520_v5 = vadd.s32 16, %v4564_v1  ;;  %s504_s22 = scalar_lea.vmem %s5243_s0, %s5259_s19  ;;  %s4451_s21 = smov 80  }
  0x23   : > { %v4587_v6 = vand.u32 7, %v519_v2  ;;  %v4589_v7 = vand.u32 7, %v521_v3  ;;  %v598_v8 = vstv %s3706_s28  ;;  %vm603_vm3 = vcmp.ge.s32.totalorder %v526_v4, 1  ;;  %v4591_v9 = vld [vmem:[%s504_s22] sm:$0xff]  ;;  %v4593_v10 = vld [vmem:[%s504_s22 + $0x8] sm:$0xff]  ;;  %v4595_v11 = vld [vmem:[%s504_s22 + $0x18] sm:$0xff] }
  0x24   : > { %v608_v12 = vstv %s607_s29  ;;  %vm621_vm4 = vcmp.le.s32.totalorder %v526_v4, 6  ;;  %vm639_vm5 = vcmp.le.s32.totalorder %v526_v4, 5  ;;  %v4597_v13 = vand.u32 7, %v520_v5  ;;  %v4612_v26 = vld [vmem:[%s504_s22 + $0x10] sm:$0xff]  ;;  %s4452_s22 = smov 112   ;;  %s4453_s23 = smov 48  }
  0x25   : > { %v570_v14 = vrot.slane %v4591_v9, 7  ;;  %v571_v15 = vrot.slane %v4593_v10, 7  ;;  %v573_v16 = vrot.slane %v4595_v11, 7  ;;  %v579_v17 = vrot.slane %v4591_v9, 1  ;;  %s5260_s26 = smov 16   ;;  %s5265_s24 = sshll.u32 %s5267_s27, 3 }
  0x26   : > { %v580_v18 = vrot.slane %v4593_v10, 1  ;;  %v582_v19 = vrot.slane %v4595_v11, 1  ;;  %v588_v20 = vrot.slane %v4591_v9, 2  ;;  %v589_v21 = vrot.slane %v4593_v10, 2  ;;  %s510_s29 = scalar_lea.vmem %s5258_s15, %s5265_s24 }
  0x27   : > { %v578_v22 = vsel %vm574_vm0, %v573_v16, %v570_v14  ;;  %v591_v23 = vrot.slane %v4595_v11, 2  ;;  %v599_v24 = vmul.f32 %v598_v8, %v4591_v9  ;;  %v600_v25 = vmul.f32 %v598_v8, %v4593_v10 }
  0x28   : > { %v586_v27 = vsel %vm583_vm1, %v579_v17, %v580_v18  ;;  %v587_v28 = vsel %vm583_vm1, %v582_v19, %v579_v17  ;;  %v595_v29 = vsel %vm592_vm2, %v588_v20, %v589_v21  ;;  %v602_v30 = vmul.f32 %v598_v8, %v4595_v11 }
  0x29   : > { %v596_v31 = vsel %vm592_vm2, %v591_v23, %v588_v20  ;;  %vm604_vm6 = vcmp.ge.s32.totalorder %v4587_v6, 1  ;;  %v609_v32 = vmul.f32 %v608_v12, %v578_v22  ;;  %vm624_vm7 = vcmp.le.s32.totalorder %v4589_v7, 6 }
  0x2a   : > { %v626_v33 = vstv %s4566_s30  ;;  %v644_v34 = vstv %s4568_s16  ;;  %v658_v35 = vstv %s4576_s17  ;;  %v577_v36 = vsel %vm574_vm0, %v570_v14, %v571_v15  ;;  %s4449_s17 = smov 96  }
  0x2b   : > { %v613_v37 = vsel %vm603_vm3, %v609_v32, 0.0  ;;  %v627_v38 = vmul.f32 %v626_v33, %v586_v27  ;;  %v630_v39 = vmul.f32 %v626_v33, %v587_v28  ;;  %v645_v40 = vmul.f32 %v644_v34, %v595_v29 }
  0x2c   : > { %v617_v41 = vadd.f32 %v613_v37, %v599_v24  ;;  %v648_v42 = vmul.f32 %v644_v34, %v596_v31  ;;  %v610_v43 = vmul.f32 %v608_v12, %v577_v36  ;;  %v572_v44 = vrot.slane %v4612_v26, 7 }
  0x2d   : > { %v631_v45 = vsel %vm621_vm4, %v627_v38, 0.0  ;;  %v634_v46 = vsel %vm624_vm7, %v630_v39, 0.0  ;;  %v649_v47 = vsel %vm639_vm5, %v645_v40, 0.0  ;;  %v581_v48 = vrot.slane %v4612_v26, 1 }
  0x2e   : > { %v635_v49 = vadd.f32 %v631_v45, %v617_v41  ;;  %v614_v50 = vsel %vm604_vm6, %v610_v43, 0.0  ;;  %v575_v51 = vsel %vm574_vm0, %v572_v44, %v573_v16  ;;  %v576_v52 = vsel %vm574_vm0, %v571_v15, %v572_v44 }
  0x2f   : > { %v618_v53 = vadd.f32 %v614_v50, %v600_v25  ;;  %v584_v54 = vsel %vm583_vm1, %v581_v48, %v582_v19  ;;  %v585_v55 = vsel %vm583_vm1, %v580_v18, %v581_v48  ;;  %v590_v56 = vrot.slane %v4612_v26, 2 }
  0x30   : > { %v653_v57 = vadd.f32 %v649_v47, %v635_v49  ;;  %v601_v58 = vmul.f32 %v598_v8, %v4612_v26  ;;  %vm605_vm8 = vcmp.ge.s32.totalorder %v4597_v13, 1  ;;  %vm606_vm9 = vcmp.ge.s32.totalorder %v4589_v7, 1 }
  0x31   : > { %v593_v59 = vsel %vm592_vm2, %v590_v56, %v591_v23  ;;  %v594_v60 = vsel %vm592_vm2, %v589_v21, %v590_v56  ;;  %v611_v61 = vmul.f32 %v608_v12, %v576_v52  ;;  %v612_v62 = vmul.f32 %v608_v12, %v575_v51 }
  0x32   : > { %v659_v63 = vadd.f32 %v658_v35, %v653_v57  ;;  %vm622_vm10 = vcmp.le.s32.totalorder %v4587_v6, 6  ;;  %vm623_vm11 = vcmp.le.s32.totalorder %v4597_v13, 6  ;;  %v628_v0 = vmul.f32 %v626_v33, %v585_v55 }
  0x33   : > { %v615_v2 = vsel %vm605_vm8, %v611_v61, 0.0  ;;  %v616_v3 = vsel %vm606_vm9, %v612_v62, 0.0  ;;  %v629_v4 = vmul.f32 %v626_v33, %v584_v54  ;;  %vm641_vm12 = vcmp.le.s32.totalorder %v4597_v13, 5 }
  0x34   : > { %v3710_v5 = vmul.f32 -1.442695, %v659_v63  ;;  %v619_v8 = vadd.f32 %v615_v2, %v601_v58  ;;  %v620_v14 = vadd.f32 %v616_v3, %v602_v30  ;;  %v632_v15 = vsel %vm622_vm10, %v628_v0, 0.0  ;;  %v4269_v3 = vld [vmem:[%s5247_s4] sm:$0xff]  }
  0x35   : > { %v633_v16 = vsel %vm623_vm11, %v629_v4, 0.0  ;;  %v646_v1 = vmul.f32 %v644_v34, %v594_v60  ;;  %v647_v17 = vmul.f32 %v644_v34, %v593_v59  ;;  %v636_v18 = vadd.f32 %v632_v15, %v618_v53  ;;  %v4270_v4 = vld [vmem:[%s5247_s4 + $0x8] sm:$0xff]   ;;  %3950 = vmatprep.subr.bf16.mxu0 %v4269_v3 }
  0x36   : > { %4291 = vpow2.f32 %v3710_v5  ;;  %v637_v12 = vadd.f32 %v633_v16, %v619_v8  ;;  %vm640_vm13 = vcmp.le.s32.totalorder %v4587_v6, 5  ;;  %v638_v19 = vadd.f32 %v634_v46, %v620_v14  ;;  %3951 = vmatpush3.bf16.msra.mxu0 %v4269_v3 }
  0x37   : > { %v651_v20 = vsel %vm641_vm12, %v647_v17, 0.0  ;;  %v650_v21 = vsel %vm640_vm13, %v646_v1, 0.0  ;;  %vm642_vm14 = vcmp.le.s32.totalorder %v4589_v7, 5  ;;  %3952 = vmatprep.subr.bf16.mxu0 %v4270_v4  ;;  %vm4448_vm0 = vmmov 0  }
  0x38   : > { %v655_v22 = vadd.f32 %v651_v20, %v637_v12  ;;  %v654_v23 = vadd.f32 %v650_v21, %v636_v18  ;;  %v652_v13 = vsel %vm642_vm14, %v648_v42, 0.0  ;;  %vm854_vm1 = vcmask 130048  }
  0x39   : > { %v656_v24 = vadd.f32 %v652_v13, %v638_v19  ;;  %v3714_v13 = vld [vmem:[%s5245_s2] ss:$0 sm:$0xff]  ;;  %vm1045_vm2 = vcmask 64512   ;;  %vm1099_vm3 = vcmask 1043456   ;;  %vm2043_vm4 = vcmask 523264  }
  0x3a   : > { %v661_v25 = vadd.f32 %v658_v35, %v655_v22  ;;  %v660_v27 = vadd.f32 %v658_v35, %v654_v23  ;;  %3953 = vmatpush3.bf16.msra.mxu0 %v4270_v4  ;;  %vm3622_vm5 = vcmask 23552  }
  0x3b   : > { %v662_v28 = vadd.f32 %v658_v35, %v656_v24 }
  0x3c   : > { %v3712_v29 = vmul.f32 -1.442695, %v661_v25  ;;  %v3711_v30 = vmul.f32 -1.442695, %v660_v27 }
  0x3d   : > { %v3713_v31 = vmul.f32 -1.442695, %v662_v28 }
  0x3e   : > { %4293 = vpow2.f32 %v3712_v29 }
  0x3f   : > { %4295 = vpow2.f32 %v3711_v30  ;;  %v3715_v30 = vld [vmem:[%s5246_s3] ss:$0 sm:$0xff] }
  0x40   : > { %v4292_v32 = vpop.eup %4291  ;;  %4297 = vpow2.f32 %v3713_v31 }
  0x41   : > { %v675_v6 = vadd.f32 1.0, %v4292_v32 }
  0x43   : > { %4299 = vrcp.f32 %v675_v6 }
  0x48   : > { %v4294_v33 = vpop.eup %4293 }
  0x49   : > { %v4296_v34 = vpop.eup %4295  ;;  %v677_v36 = vadd.f32 1.0, %v4294_v33 }
  0x4a   : > { %v4298_v7 = vpop.eup %4297  ;;  %v676_v37 = vadd.f32 1.0, %v4296_v34 }
  0x4b   : > { %4301 = vrcp.f32 %v677_v36  ;;  %v678_v38 = vadd.f32 1.0, %v4298_v7 }
  0x4c   : > { %4303 = vrcp.f32 %v676_v37 }
  0x4d   : > { %v4300_v39 = vpop.eup %4299  ;;  %4305 = vrcp.f32 %v678_v38 }
  0x4e   : > { %v4659_v35 = vadd.f32 %v4300_v39, %v4591_v9 }
  0x50   : > { %v694_v40 = vsel %vm693_vm15, %v4659_v35, 0.0 }
  0x51   : > { %695 = vadd.xlane.f32.xlu0 %v694_v40 }
  0x55   : > { %v4302_v41 = vpop.eup %4301 }
  0x56   : > { %v4304_v42 = vpop.eup %4303  ;;  %v4664_v43 = vadd.f32 %v4302_v41, %v4612_v26  ;;  %v4447_v41 = vmov 0.0  }
  0x57   : > { %v4306_v44 = vpop.eup %4305  ;;  %v4667_v45 = vadd.f32 %v4304_v42, %v4593_v10  ;;  %3958 = vmatprep.subr.bf16.mxu1 %v4447_v41  ;;  %3964 = vmatprep.subr.bf16.mxu0 %v4447_v41 }
  0x58   : > { %v700_v46 = vsel %vm693_vm15, %v4664_v43, 0.0  ;;  %v4672_v47 = vadd.f32 %v4306_v44, %v4595_v11  ;;  %3960 = vmatprep.mubr.msk.bf16.mxu1 %vm4448_vm0, %v4447_v41 }
  0x59   : > { %701 = vadd.xlane.f32.xlu1 %v700_v46  ;;  %v697_v9 = vsel %vm693_vm15, %v4667_v45, 0.0 }
  0x5a   : > { %698 = vadd.xlane.f32.xlu0 %v697_v9  ;;  %v703_v48 = vsel %vm693_vm15, %v4672_v47, 0.0 }
  0x5d   : > { %704 = vadd.xlane.f32.xlu1 %v703_v48 }
  0xde   : > { %v696_v26 = vpop.xlane.xlu0 %695 }
  0xdf   : > { %v707_v49 = vmul.f32 0.03125, %v696_v26 }
  0xe1   : > { %v711_v10 = vsub.f32 %v4659_v35, %v707_v49 }
  0xe3   : > { %v715_v50 = vmul.f32 %v711_v10, %v711_v10 }
  0xe5   : > { %v719_v51 = vsel %vm693_vm15, %v715_v50, 0.0 }
  0xe6   : > { %v702_v52 = vpop.xlane.xlu1 %701  ;;  %720 = vadd.xlane.f32.xlu0 %v719_v51 }
  0xe7   : > { %v709_v11 = vmul.f32 0.03125, %v702_v52  ;;  %v699_v53 = vpop.xlane.xlu0 %698 }
  0xe8   : > { %v708_v54 = vmul.f32 0.03125, %v699_v53 }
  0xe9   : > { %v713_v55 = vsub.f32 %v4664_v43, %v709_v11 }
  0xea   : > { %v712_v56 = vsub.f32 %v4667_v45, %v708_v54  ;;  %v705_v57 = vpop.xlane.xlu1 %704 }
  0xeb   : > { %v710_v58 = vmul.f32 0.03125, %v705_v57  ;;  %v717_v59 = vmul.f32 %v713_v55, %v713_v55 }
  0xec   : > { %v716_v60 = vmul.f32 %v712_v56, %v712_v56 }
  0xed   : > { %v714_v61 = vsub.f32 %v4672_v47, %v710_v58  ;;  %v725_v62 = vsel %vm693_vm15, %v717_v59, 0.0 }
  0xee   : > { %726 = vadd.xlane.f32.xlu0 %v725_v62  ;;  %v722_v63 = vsel %vm693_vm15, %v716_v60, 0.0 }
  0xef   : > { %723 = vadd.xlane.f32.xlu1 %v722_v63  ;;  %v718_v0 = vmul.f32 %v714_v61, %v714_v61 }
  0xf1   : > { %v728_v2 = vsel %vm693_vm15, %v718_v0, 0.0 }
  0xf3   : > { %729 = vadd.xlane.f32.xlu1 %v728_v2 }
 0x173   : > { %v721_v5 = vpop.xlane.xlu0 %720 }
 0x174   : > { %v731_v8 = vmul.f32 0.03125, %v721_v5 }
 0x176   : > { %v735_v14 = vadd.f32 1e-05, %v731_v8 }
 0x178   : > { %4307 = vrsqrt.f32 %v735_v14 }
 0x17b   : > { %v727_v15 = vpop.xlane.xlu0 %726 }
 0x17c   : > { %v724_v16 = vpop.xlane.xlu1 %723  ;;  %v733_v1 = vmul.f32 0.03125, %v727_v15 }
 0x17d   : > { %v732_v17 = vmul.f32 0.03125, %v724_v16 }
 0x17e   : > { %v737_v18 = vadd.f32 1e-05, %v733_v1 }
 0x17f   : > { %v736_v12 = vadd.f32 1e-05, %v732_v17 }
 0x180   : > { %4309 = vrsqrt.f32 %v737_v18  ;;  %v730_v19 = vpop.xlane.xlu1 %729 }
 0x181   : > { %4311 = vrsqrt.f32 %v736_v12  ;;  %v734_v20 = vmul.f32 0.03125, %v730_v19 }
 0x182   : > { %v4308_v22 = vpop.eup %4307 }
 0x183   : > { %v738_v21 = vadd.f32 1e-05, %v734_v20  ;;  %v743_v23 = vmul.f32 %v4308_v22, %v711_v10 }
 0x185   : > { %4313 = vrsqrt.f32 %v738_v21  ;;  %v753_v28 = vmul.f32 %v3714_v13, %v743_v23 }
 0x187   : > { %v763_v6 = vadd.f32 %v3715_v30, %v753_v28 }
 0x18a   : > { %v4310_v24 = vpop.eup %4309 }
 0x18b   : > { %v4312_v25 = vpop.eup %4311  ;;  %v745_v29 = vmul.f32 %v4310_v24, %v713_v55 }
 0x18c   : > { %v744_v27 = vmul.f32 %v4312_v25, %v712_v56 }
 0x18d   : > { %v755_v36 = vmul.f32 %v3714_v13, %v745_v29 }
 0x18e   : > { %v754_v31 = vmul.f32 %v3714_v13, %v744_v27 }
 0x18f   : > { %v4314_v32 = vpop.eup %4313  ;;  %v765_v38 = vadd.f32 %v3715_v30, %v755_v36 }
 0x190   : > { %v764_v33 = vadd.f32 %v3715_v30, %v754_v31  ;;  %v746_v34 = vmul.f32 %v4314_v32, %v714_v61 }
 0x192   : > { %v771_v7 = vpack.c.bf16 %v764_v33, %v763_v6  ;;  %v756_v37 = vmul.f32 %v3714_v13, %v746_v34 }
 0x194   : > { %3954 = vmatprep.mubr.msk.bf16.mxu0 %vm693_vm15, %v771_v7  ;;  %v766_v39 = vadd.f32 %v3715_v30, %v756_v37 }
 0x196   : > { %v772_v40 = vpack.c.bf16 %v766_v39, %v765_v38 }
 0x198   : > { %3955 = vmatmul.mubr.msk.bf16.vlgmr.msra.gmra.mrb[0].mxu0 %vm693_vm15, %v772_v40 }
 0x199   : > { %3966 = vmatprep.mubr.msk.bf16.mxu0 %vm4448_vm0, %v4447_v41 }
 0x26b   : > { %v3956_v42 = vpop.f32.mrb[0].mxu0 }
 0x26c   : > { %v825_v44 = vpop.f32.mrb[1].mxu0  ;;  %v4714_v49 = vpack.c.bf16 %v3956_v42, %v3956_v42 }
 0x26d   : > { %v4706_v46 = vpack.c.bf16 %v825_v44, %v825_v44  ;;  %v3957_v9 = vpop.f32.mrb[2].mxu0 }
 0x26e   : > { %v828_v48 = vpop.f32.mrb[3].mxu0  ;;  %v4718_v10 = vpack.c.bf16 %v3957_v9, %v3957_v9 }
 0x26f   : > { %v4708_v26 = vpack.c.bf16 %v828_v48, %v828_v48  ;;  %852 = vrot.lane.b32.xlu0 %v4706_v46, %s4449_s17 }
 0x271   : > { %901 = vrot.lane.b32.xlu1 %v4708_v26, %s4449_s17 }
 0x275   : > { %949 = vrot.lane.b32.xlu1 %v4714_v49, %s4449_s17 }
 0x279   : > { %997 = vrot.lane.b32.xlu1 %v4718_v10, %s4449_s17 }
 0x2e1   : > { %v853_v50 = vpop.permute.xlu0 %852 }
 0x2e2   : > { %v859_v51 = vsel %vm854_vm1, %v853_v50, 0 }
 0x2e3   : > { %3959 = vmatpush3.bf16.xpose.msra.mxu1 %v859_v51  ;;  %v902_v52 = vpop.permute.xlu1 %901 }
 0x2e4   : > { %v907_v11 = vsel %vm854_vm1, %v902_v52, 0  ;;  %3970 = vmatprep.subr.bf16.mxu1 %v4447_v41 }
 0x2e5   : > { %3965 = vmatpush3.bf16.xpose.msra.mxu0 %v907_v11 }
 0x2e6   : > { %3976 = vmatprep.subr.bf16.mxu0 %v4447_v41 }
 0x2e7   : > { %v950_v53 = vpop.permute.xlu1 %949 }
 0x2e8   : > { %v955_v54 = vsel %vm854_vm1, %v950_v53, 0 }
 0x2ea   : > { %3961 = vmatmul.mubr.msk.bf16.vlgmr.msra.gmra.mrb[0].mxu1 %vm854_vm1, %v4706_v46 }
 0x2eb   : > { %3971 = vmatpush3.bf16.xpose.msra.mxu1 %v955_v54  ;;  %v998_v55 = vpop.permute.xlu1 %997  ;;  %3972 = vmatprep.mubr.msk.bf16.mxu1 %vm4448_vm0, %v4447_v41 }
 0x2ec   : > { %v1003_v56 = vsel %vm854_vm1, %v998_v55, 0  ;;  %3967 = vmatmul.mubr.msk.bf16.vlgmr.msra.gmra.mrb[4].mxu0 %vm854_vm1, %v4708_v26  ;;  %3982 = vmatprep.subr.bf16.mxu1 %v4447_v41 }
 0x2ed   : > { %3977 = vmatpush3.bf16.xpose.msra.mxu0 %v1003_v56  ;;  %3978 = vmatprep.mubr.msk.bf16.mxu0 %vm4448_vm0, %v4447_v41 }
 0x2ee   : > { %3988 = vmatprep.subr.bf16.mxu0 %v4447_v41 }
 0x2f2   : > { %3973 = vmatmul.mubr.msk.bf16.vlgmr.msra.gmra.mrb[4].mxu1 %vm854_vm1, %v4714_v49 }
 0x2f3   : > { %3984 = vmatprep.mubr.msk.bf16.mxu1 %vm4448_vm0, %v4447_v41 }
 0x2f4   : > { %3979 = vmatmul.mubr.msk.bf16.vlgmr.msra.gmra.mrb[8].mxu0 %vm854_vm1, %v4718_v10 }
 0x2f5   : > { %3990 = vmatprep.mubr.msk.bf16.mxu0 %vm4448_vm0, %v4447_v41 }
 0x3bd   : > { %v895_v57 = vpop.f32.mrb[0].mxu1 }
 0x3be   : > { %v3962_v58 = vpop.f32.mrb[1].mxu1  ;;  %v1046_v59 = vsel %vm1045_vm2, %v895_v57, -inf }
 0x3bf   : > { %1047 = vmax.xlane.f32.xlu0 %v1046_v59  ;;  %v898_v60 = vpop.f32.mrb[2].mxu1  ;;  %v943_v61 = vpop.f32.mrb[4].mxu0 }
 0x3c0   : > { %v3963_v62 = vpop.f32.mrb[3].mxu1  ;;  %v3968_v63 = vpop.f32.mrb[5].mxu0  ;;  %v1049_v0 = vsel %vm1045_vm2, %v943_v61, -inf }
 0x3c1   : > { %1050 = vmax.xlane.f32.xlu1 %v1049_v0  ;;  %v946_v2 = vpop.f32.mrb[6].mxu0 }
 0x3c2   : > { %v3969_v3 = vpop.f32.mrb[7].mxu0 }
 0x3c5   : > { %v991_v4 = vpop.f32.mrb[4].mxu1 }
 0x3c6   : > { %v3974_v5 = vpop.f32.mrb[5].mxu1  ;;  %v1052_v8 = vsel %vm1045_vm2, %v991_v4, -inf }
 0x3c7   : > { %1053 = vmax.xlane.f32.xlu0 %v1052_v8  ;;  %v994_v14 = vpop.f32.mrb[6].mxu1  ;;  %v1039_v15 = vpop.f32.mrb[8].mxu0 }
 0x3c8   : > { %v3975_v16 = vpop.f32.mrb[7].mxu1  ;;  %v3980_v1 = vpop.f32.mrb[9].mxu0  ;;  %v1055_v12 = vsel %vm1045_vm2, %v1039_v15, -inf }
 0x3c9   : > { %v1042_v17 = vpop.f32.mrb[10].mxu0 }
 0x3ca   : > { %v3981_v18 = vpop.f32.mrb[11].mxu0 }
 0x3cb   : > { %1056 = vmax.xlane.f32.xlu0 %v1055_v12 }
 0x3d2   : > { %1143 = vrot.lane.b32.xlu1 %v4708_v26, %s4450_s20 }
 0x3d6   : > { %1191 = vrot.lane.b32.xlu1 %v4714_v49, %s4450_s20 }
 0x3da   : > { %1239 = vrot.lane.b32.xlu1 %v4718_v10, %s4450_s20 }
 0x44c   : > { %v1048_v19 = vpop.xlane.xlu0 %1047 }
 0x44d   : > { %v1058_v20 = vsub.f32 %v895_v57, %v1048_v19 }
 0x44e   : > { %v1051_v21 = vpop.xlane.xlu1 %1050 }
 0x44f   : > { %v1062_v22 = vmul.f32 1.442695, %v1058_v20  ;;  %v1059_v23 = vsub.f32 %v943_v61, %v1051_v21 }
 0x451   : > { %4315 = vpow2.f32 %v1062_v22  ;;  %v1064_v13 = vmul.f32 1.442695, %v1059_v23 }
 0x452   : > { %v1144_v24 = vpop.permute.xlu1 %1143 }
 0x453   : > { %4317 = vpow2.f32 %v1064_v13  ;;  %v1149_v25 = vsel %vm1099_vm3, %v1144_v24, 0 }
 0x454   : > { %3989 = vmatpush3.bf16.msra.mxu0 %v1149_v25  ;;  %v1054_v31 = vpop.xlane.xlu0 %1053 }
 0x455   : > { %4000 = vmatprep.subr.bf16.mxu0 %v4447_v41  ;;  %v1060_v6 = vsub.f32 %v991_v4, %v1054_v31 }
 0x456   : > { %v1192_v40 = vpop.permute.xlu1 %1191 }
 0x457   : > { %v1066_v34 = vmul.f32 1.442695, %v1060_v6  ;;  %v1197_v55 = vsel %vm1099_vm3, %v1192_v40, 0 }
 0x458   : > { %v1057_v32 = vpop.xlane.xlu0 %1056 }
 0x459   : > { %v1061_v33 = vsub.f32 %v1039_v15, %v1057_v32  ;;  %4319 = vpow2.f32 %v1066_v34 }
 0x45a   : > { %v1240_v42 = vpop.permute.xlu1 %1239 }
 0x45b   : > { %v4316_v27 = vpop.eup %4315  ;;  %v1068_v36 = vmul.f32 1.442695, %v1061_v33  ;;  %v1245_v57 = vsel %vm1099_vm3, %v1240_v42, 0 }
 0x45c   : > { %v1070_v28 = vsel %vm1045_vm2, %v4316_v27, 0.0 }
 0x45d   : > { %v4318_v29 = vpop.eup %4317  ;;  %1071 = vadd.xlane.f32.xlu0 %v1070_v28  ;;  %4321 = vpow2.f32 %v1068_v36 }
 0x45e   : > { %v1073_v30 = vsel %vm1045_vm2, %v4318_v29, 0.0 }
 0x45f   : > { %1074 = vadd.xlane.f32.xlu1 %v1073_v30 }
 0x463   : > { %v4320_v7 = vpop.eup %4319 }
 0x464   : > { %v1076_v38 = vsel %vm1045_vm2, %v4320_v7, 0.0 }
 0x467   : > { %v4322_v37 = vpop.eup %4321 }
 0x468   : > { %v1079_v39 = vsel %vm1045_vm2, %v4322_v37, 0.0 }
 0x470   : > { %1339 = vrot.lane.b32.xlu1 %v4708_v26, %s4451_s21 }
 0x473   : > { %1094 = vrot.lane.b32.xlu0 %v4706_v46, %s4450_s20 }
 0x492   : > { %1077 = vadd.xlane.f32.xlu0 %v1076_v38 }
 0x494   : > { %1080 = vadd.xlane.f32.xlu1 %v1079_v39 }
 0x4a5   : > { %1337 = vrot.lane.b32.xlu1 %v4708_v26, %s4452_s22 }
 0x4a8   : > { %1289 = vrot.lane.b32.xlu0 %v4706_v46, %s4451_s21 }
 0x4a9   : > { %1439 = vrot.lane.b32.xlu1 %v4718_v10, %s4451_s21 }
 0x4ac   : > { %1287 = vrot.lane.b32.xlu0 %v4706_v46, %s4452_s22 }
 0x4ad   : > { %1437 = vrot.lane.b32.xlu1 %v4718_v10, %s4452_s22 }
 0x4b0   : > { %1389 = vrot.lane.b32.xlu0 %v4714_v49, %s4451_s21 }
 0x4b4   : > { %1387 = vrot.lane.b32.xlu0 %v4714_v49, %s4452_s22 }
 0x4ea   : > { %v1072_v44 = vpop.xlane.xlu0 %1071 }
 0x4eb   : > { %4323 = vrcp.f32 %v1072_v44 }
 0x4ec   : > { %v1075_v9 = vpop.xlane.xlu1 %1074 }
 0x4ed   : > { %4325 = vrcp.f32 %v1075_v9 }
 0x4ee   : > { %v1095_v48 = vpop.permute.xlu0 %1094 }
 0x4ef   : > { %v1101_v50 = vsel %vm1099_vm3, %v1095_v48, 0 }
 0x4f0   : > { %3983 = vmatpush3.bf16.msra.mxu1 %v1101_v50  ;;  %v1340_v58 = vpop.permute.xlu1 %1339 }
 0x4f1   : > { %3994 = vmatprep.subr.bf16.mxu1 %v4447_v41  ;;  %v1345_v15 = vsel %vm854_vm1, %v1340_v58, 0 }
 0x4f5   : > { %v4324_v51 = vpop.eup %4323 }
 0x4f6   : > { %v1086_v52 = vmul.f32 %v4324_v51, %v4316_v27 }
 0x4f7   : > { %v4326_v11 = vpop.eup %4325 }
 0x4f8   : > { %v1087_v53 = vmul.f32 %v4326_v11, %v4318_v29  ;;  %v1090_v54 = vpack.c.bf16 %v1086_v52, %v1086_v52 }
 0x4fa   : > { %3985 = vmatmul.mubr.msk.bf16.vlgmr.msra.gmra.mrb[8].mxu1 %vm1045_vm2, %v1090_v54  ;;  %v1091_v56 = vpack.c.bf16 %v1087_v53, %v1087_v53 }
 0x4fb   : > { %3995 = vmatpush3.bf16.msra.mxu1 %v1197_v55  ;;  %3996 = vmatprep.mubr.msk.bf16.mxu1 %vm4448_vm0, %v4447_v41 }
 0x4fc   : > { %3991 = vmatmul.mubr.msk.bf16.vlgmr.msra.gmra.mrb[12].mxu0 %vm1045_vm2, %v1091_v56  ;;  %4006 = vmatprep.subr.bf16.mxu1 %v4447_v41 }
 0x4fd   : > { %4001 = vmatpush3.bf16.msra.mxu0 %v1245_v57  ;;  %4002 = vmatprep.mubr.msk.bf16.mxu0 %vm4448_vm0, %v4447_v41 }
 0x4fe   : > { %4012 = vmatprep.subr.bf16.mxu0 %v4447_v41 }
 0x51f   : > { %v1078_v59 = vpop.xlane.xlu0 %1077 }
 0x520   : > { %4327 = vrcp.f32 %v1078_v59 }
 0x521   : > { %v1081_v60 = vpop.xlane.xlu1 %1080 }
 0x522   : > { %4329 = vrcp.f32 %v1081_v60 }
 0x523   : > { %v1290_v61 = vpop.permute.xlu0 %1289 }
 0x524   : > { %v1295_v5 = vsel %vm854_vm1, %v1290_v61, 0 }
 0x525   : > { %v1338_v14 = vpop.permute.xlu1 %1337 }
 0x527   : > { %v1288_v4 = vpop.permute.xlu0 %1287 }
 0x529   : > { %v1440_v1 = vpop.permute.xlu1 %1439 }
 0x52a   : > { %v4328_v62 = vpop.eup %4327  ;;  %v1445_v18 = vsel %vm854_vm1, %v1440_v1, 0 }
 0x52b   : > { %v1088_v63 = vmul.f32 %v4328_v62, %v4320_v7  ;;  %v1390_v16 = vpop.permute.xlu0 %1389 }
 0x52c   : > { %v4330_v0 = vpop.eup %4329  ;;  %v1395_v17 = vsel %vm854_vm1, %v1390_v16, 0 }
 0x52d   : > { %v1089_v2 = vmul.f32 %v4330_v0, %v4322_v37  ;;  %v1092_v3 = vpack.c.bf16 %v1088_v63, %v1088_v63  ;;  %v1438_v19 = vpop.permute.xlu1 %1437 }
 0x52f   : > { %3997 = vmatmul.mubr.msk.bf16.vlgmr.msra.gmra.mrb[12].mxu1 %vm1045_vm2, %v1092_v3  ;;  %v1093_v8 = vpack.c.bf16 %v1089_v2, %v1089_v2  ;;  %v1388_v12 = vpop.permute.xlu0 %1387 }
 0x530   : > { %4007 = vmatpush3.bf16.xpose.msra.mxu1 %v1295_v5  ;;  %4008 = vmatprep.mubr.msk.bf16.mxu1 %vm4448_vm0, %v4447_v41 }
 0x531   : > { %4003 = vmatmul.mubr.msk.bf16.vlgmr.msra.gmra.mrb[16].mxu0 %vm1045_vm2, %v1093_v8  ;;  %4018 = vmatprep.subr.bf16.mxu1 %v4447_v41 }
 0x532   : > { %4013 = vmatpush3.bf16.xpose.msra.mxu0 %v1345_v15  ;;  %4014 = vmatprep.mubr.msk.bf16.mxu0 %vm4448_vm0, %v4447_v41 }
 0x533   : > { %4024 = vmatprep.subr.bf16.mxu0 %v4447_v41 }
 0x537   : > { %4009 = vmatmul.mubr.msk.bf16.vlgmr.msra.gmra.mrb[16].mxu1 %vm854_vm1, %v1288_v4 }
 0x538   : > { %4019 = vmatpush3.bf16.xpose.msra.mxu1 %v1395_v17  ;;  %4020 = vmatprep.mubr.msk.bf16.mxu1 %vm4448_vm0, %v4447_v41 }
 0x539   : > { %4015 = vmatmul.mubr.msk.bf16.vlgmr.msra.gmra.mrb[20].mxu0 %vm854_vm1, %v1338_v14  ;;  %4030 = vmatprep.subr.bf16.mxu1 %v4447_v41 }
 0x53a   : > { %4025 = vmatpush3.bf16.xpose.msra.mxu0 %v1445_v18  ;;  %4026 = vmatprep.mubr.msk.bf16.mxu0 %vm4448_vm0, %v4447_v41 }
 0x53b   : > { %4036 = vmatprep.subr.bf16.mxu0 %v4447_v41 }
 0x53f   : > { %4021 = vmatmul.mubr.msk.bf16.vlgmr.msra.gmra.mrb[20].mxu1 %vm854_vm1, %v1388_v12 }
 0x540   : > { %4032 = vmatprep.mubr.msk.bf16.mxu1 %vm4448_vm0, %v4447_v41 }
 0x541   : > { %4027 = vmatmul.mubr.msk.bf16.vlgmr.msra.gmra.mrb[24].mxu0 %vm854_vm1, %v1438_v19 }
 0x542   : > { %4038 = vmatprep.mubr.msk.bf16.mxu0 %vm4448_vm0, %v4447_v41 }
 0x5cd   : > { %v4818_v20 = vpop.f32.mrb[8].mxu1 }
 0x5ce   : > { %v3986_v21 = vpop.f32.mrb[9].mxu1 }
 0x5cf   : > { %v1140_v22 = vpop.f32.mrb[10].mxu1  ;;  %v4820_v23 = vpop.f32.mrb[12].mxu0 }
 0x5d0   : > { %v3987_v13 = vpop.f32.mrb[11].mxu1  ;;  %v3992_v24 = vpop.f32.mrb[13].mxu0 }
 0x5d1   : > { %v1188_v25 = vpop.f32.mrb[14].mxu0 }
 0x5d2   : > { %v3993_v27 = vpop.f32.mrb[15].mxu0 }
 0x602   : > { %v4822_v28 = vpop.f32.mrb[12].mxu1 }
 0x603   : > { %v3998_v29 = vpop.f32.mrb[13].mxu1 }
 0x604   : > { %v1236_v30 = vpop.f32.mrb[14].mxu1  ;;  %v4824_v31 = vpop.f32.mrb[16].mxu0 }
 0x605   : > { %v3999_v32 = vpop.f32.mrb[15].mxu1  ;;  %v4004_v6 = vpop.f32.mrb[17].mxu0 }
 0x606   : > { %v1284_v33 = vpop.f32.mrb[18].mxu0 }
 0x607   : > { %v4005_v34 = vpop.f32.mrb[19].mxu0 }
 0x60a   : > { %v1331_v36 = vpop.f32.mrb[16].mxu1 }
 0x60b   : > { %v4010_v7 = vpop.f32.mrb[17].mxu1  ;;  %v1487_v37 = vsel %vm1045_vm2, %v1331_v36, -inf }
 0x60c   : > { %1488 = vmax.xlane.f32.xlu0 %v1487_v37  ;;  %v1334_v38 = vpop.f32.mrb[18].mxu1  ;;  %v1381_v39 = vpop.f32.mrb[20].mxu0 }
 0x60d   : > { %v4011_v40 = vpop.f32.mrb[19].mxu1  ;;  %v4016_v42 = vpop.f32.mrb[21].mxu0  ;;  %v1490_v44 = vsel %vm1045_vm2, %v1381_v39, -inf }
 0x60e   : > { %1491 = vmax.xlane.f32.xlu1 %v1490_v44  ;;  %v1384_v9 = vpop.f32.mrb[22].mxu0 }
 0x60f   : > { %v4017_v48 = vpop.f32.mrb[23].mxu0 }
 0x610   : > { %v4271_v48 = vld [vmem:[%s5248_s5] sm:$0xff]  }
 0x612   : > { %v1431_v50 = vpop.f32.mrb[20].mxu1 }
 0x613   : > { %v4022_v51 = vpop.f32.mrb[21].mxu1  ;;  %v1493_v52 = vsel %vm1045_vm2, %v1431_v50, -inf }
 0x614   : > { %1494 = vmax.xlane.f32.xlu0 %v1493_v52  ;;  %v1434_v11 = vpop.f32.mrb[22].mxu1  ;;  %v1481_v53 = vpop.f32.mrb[24].mxu0 }
 0x615   : > { %v4023_v54 = vpop.f32.mrb[23].mxu1  ;;  %v4028_v55 = vpop.f32.mrb[25].mxu0  ;;  %v1496_v58 = vsel %vm1045_vm2, %v1481_v53, -inf }
 0x616   : > { %v1484_v56 = vpop.f32.mrb[26].mxu0 }
 0x617   : > { %v4029_v57 = vpop.f32.mrb[27].mxu0 }
 0x618   : > { %1497 = vmax.xlane.f32.xlu0 %v1496_v58 }
 0x699   : > { %v1489_v59 = vpop.xlane.xlu0 %1488 }
 0x69a   : > { %v1499_v60 = vsub.f32 %v1331_v36, %v1489_v59 }
 0x69b   : > { %v1492_v61 = vpop.xlane.xlu1 %1491 }
 0x69c   : > { %v1503_v62 = vmul.f32 1.442695, %v1499_v60  ;;  %v1500_v63 = vsub.f32 %v1381_v39, %v1492_v61 }
 0x69e   : > { %4331 = vpow2.f32 %v1503_v62  ;;  %v1505_v0 = vmul.f32 1.442695, %v1500_v63  ;;  %v4272_v62 = vld [vmem:[%s5248_s5 + $0x8] sm:$0xff]  }
 0x6a0   : > { %4333 = vpow2.f32 %v1505_v0 }
 0x6a1   : > { %v1495_v2 = vpop.xlane.xlu0 %1494 }
 0x6a2   : > { %v1501_v3 = vsub.f32 %v1431_v50, %v1495_v2 }
 0x6a4   : > { %v1507_v4 = vmul.f32 1.442695, %v1501_v3 }
 0x6a5   : > { %v1498_v17 = vpop.xlane.xlu0 %1497 }
 0x6a6   : > { %4335 = vpow2.f32 %v1507_v4  ;;  %v1502_v18 = vsub.f32 %v1481_v53, %v1498_v17 }
 0x6a8   : > { %v4332_v5 = vpop.eup %4331  ;;  %v1509_v12 = vmul.f32 1.442695, %v1502_v18 }
 0x6a9   : > { %v1511_v8 = vsel %vm1045_vm2, %v4332_v5, 0.0 }
 0x6aa   : > { %v4334_v14 = vpop.eup %4333  ;;  %1512 = vadd.xlane.f32.xlu0 %v1511_v8  ;;  %4337 = vpow2.f32 %v1509_v12 }
 0x6ab   : > { %v1514_v15 = vsel %vm1045_vm2, %v4334_v14, 0.0 }
 0x6ac   : > { %1515 = vadd.xlane.f32.xlu1 %v1514_v15 }
 0x6b0   : > { %v4336_v16 = vpop.eup %4335 }
 0x6b1   : > { %v1517_v1 = vsel %vm1045_vm2, %v4336_v16, 0.0 }
 0x6b2   : > { %1518 = vadd.xlane.f32.xlu0 %v1517_v1 }
 0x6b4   : > { %v4338_v19 = vpop.eup %4337 }
 0x6b5   : > { %v1520_v21 = vsel %vm1045_vm2, %v4338_v19, 0.0 }
 0x6bd   : > { %1583 = vrot.lane.b32.xlu1 %v4708_v26, %s4453_s23 }
 0x6c1   : > { %1631 = vrot.lane.b32.xlu1 %v4714_v49, %s4453_s23 }
 0x6c8   : > { %1535 = vrot.lane.b32.xlu0 %v4706_v46, %s4453_s23 }
 0x6e5   : > { %1521 = vadd.xlane.f32.xlu1 %v1520_v21 }
 0x6f6   : > { %1679 = vrot.lane.b32.xlu1 %v4718_v10, %s4453_s23 }
 0x737   : > { %v1513_v22 = vpop.xlane.xlu0 %1512 }
 0x738   : > { %4339 = vrcp.f32 %v1513_v22 }
 0x739   : > { %v1516_v26 = vpop.xlane.xlu1 %1515 }
 0x73a   : > { %4341 = vrcp.f32 %v1516_v26 }
 0x73d   : > { %v1584_v13 = vpop.permute.xlu1 %1583 }
 0x73e   : > { %v1589_v49 = vsel %vm1099_vm3, %v1584_v13, 0 }
 0x73f   : > { %v1519_v24 = vpop.xlane.xlu0 %1518  ;;  %4037 = vmatpush3.bf16.msra.mxu0 %v1589_v49 }
 0x740   : > { %4343 = vrcp.f32 %v1519_v24  ;;  %4048 = vmatprep.subr.bf16.mxu0 %v4447_v41 }
 0x741   : > { %v1632_v10 = vpop.permute.xlu1 %1631 }
 0x742   : > { %v4340_v46 = vpop.eup %4339  ;;  %v1637_v34 = vsel %vm1099_vm3, %v1632_v10, 0 }
 0x743   : > { %v1527_v25 = vmul.f32 %v4340_v46, %v4332_v5  ;;  %v1536_v27 = vpop.permute.xlu0 %1535 }
 0x744   : > { %v4342_v29 = vpop.eup %4341  ;;  %v1541_v30 = vsel %vm1099_vm3, %v1536_v27, 0 }
 0x745   : > { %v1528_v32 = vmul.f32 %v4342_v29, %v4334_v14  ;;  %4031 = vmatpush3.bf16.msra.mxu1 %v1541_v30  ;;  %v1531_v6 = vpack.c.bf16 %v1527_v25, %v1527_v25 }
 0x746   : > { %4042 = vmatprep.subr.bf16.mxu1 %v4447_v41 }
 0x747   : > { %v1532_v33 = vpack.c.bf16 %v1528_v32, %v1528_v32 }
 0x748   : > { %4033 = vmatmul.mubr.msk.bf16.vlgmr.msra.gmra.mrb[24].mxu1 %vm1045_vm2, %v1531_v6 }
 0x749   : > { %4039 = vmatmul.mubr.msk.bf16.vlgmr.msra.gmra.mrb[28].mxu0 %vm1045_vm2, %v1532_v33  ;;  %4043 = vmatpush3.bf16.msra.mxu1 %v1637_v34 }
 0x74a   : > { %v4344_v36 = vpop.eup %4343  ;;  %4044 = vmatprep.mubr.msk.bf16.mxu1 %vm4448_vm0, %v4447_v41  ;;  %4050 = vmatprep.mubr.msk.bf16.mxu0 %vm4448_vm0, %v4447_v41 }
 0x74b   : > { %v1529_v7 = vmul.f32 %v4344_v36, %v4336_v16  ;;  %4054 = vmatprep.subr.bf16.mxu1 %v4271_v48 }
 0x74d   : > { %v1533_v37 = vpack.c.bf16 %v1529_v7, %v1529_v7 }
 0x750   : > { %4045 = vmatmul.mubr.msk.bf16.vlgmr.msra.gmra.mrb[28].mxu1 %vm1045_vm2, %v1533_v37 }
 0x751   : > { %4055 = vmatpush3.bf16.msra.mxu1 %v4271_v48 }
 0x752   : > { %4056 = vmatprep.subr.bf16.mxu1 %v4272_v62 }
 0x755   : > { %4057 = vmatpush3.bf16.msra.mxu1 %v4272_v62 }
 0x772   : > { %v1522_v38 = vpop.xlane.xlu1 %1521 }
 0x773   : > { %4345 = vrcp.f32 %v1522_v38 }
 0x776   : > { %v1680_v39 = vpop.permute.xlu1 %1679 }
 0x777   : > { %v1685_v40 = vsel %vm1099_vm3, %v1680_v39, 0 }
 0x778   : > { %4049 = vmatpush3.bf16.msra.mxu0 %v1685_v40 }
 0x77d   : > { %v4346_v42 = vpop.eup %4345 }
 0x77e   : > { %v1530_v44 = vmul.f32 %v4346_v42, %v4338_v19 }
 0x780   : > { %v1534_v9 = vpack.c.bf16 %v1530_v44, %v1530_v44 }
 0x782   : > { %4051 = vmatmul.mubr.msk.bf16.vlgmr.msra.gmra.mrb[32].mxu0 %vm1045_vm2, %v1534_v9 }
 0x81b   : > { %v1577_v50 = vpop.f32.mrb[24].mxu1 }
 0x81c   : > { %v4034_v51 = vpop.f32.mrb[25].mxu1  ;;  %v1625_v52 = vpop.f32.mrb[28].mxu0 }
 0x81d   : > { %v4249_v11 = vpack.i.bf16 %v1625_v52, %v1577_v50  ;;  %v1580_v53 = vpop.f32.mrb[26].mxu1  ;;  %v4040_v54 = vpop.f32.mrb[29].mxu0 }
 0x81e   : > { %v4035_v55 = vpop.f32.mrb[27].mxu1  ;;  %v1628_v56 = vpop.f32.mrb[30].mxu0  ;;  %v4273_v54 = vld [vmem:[%s5252_s9] sm:$0xff]  }
 0x81f   : > { %4250 = vrot.lane.b32.xlu0 %v4249_v11, %s5260_s26  ;;  %v4041_v57 = vpop.f32.mrb[31].mxu0  ;;  %4062 = vmatprep.subr.bf16.mxu0 %v4273_v54  ;;  %v4274_v55 = vld [vmem:[%s5252_s9 + $0x8] sm:$0xff]  }
 0x820   : > { %4063 = vmatpush3.bf16.msra.mxu0 %v4273_v54 }
 0x821   : > { %4064 = vmatprep.subr.bf16.mxu0 %v4274_v55 }
 0x823   : > { %v1673_v58 = vpop.f32.mrb[28].mxu1 }
 0x824   : > { %v4046_v59 = vpop.f32.mrb[29].mxu1  ;;  %4065 = vmatpush3.bf16.msra.mxu0 %v4274_v55 }
 0x825   : > { %v1676_v60 = vpop.f32.mrb[30].mxu1 }
 0x826   : > { %v4047_v61 = vpop.f32.mrb[31].mxu1 }
 0x855   : > { %v1721_v63 = vpop.f32.mrb[32].mxu0 }
 0x856   : > { %v4254_v0 = vpack.i.bf16 %v1721_v63, %v1673_v58  ;;  %v4052_v2 = vpop.f32.mrb[33].mxu0 }
 0x857   : > { %v1724_v3 = vpop.f32.mrb[34].mxu0 }
 0x858   : > { %4255 = vrot.lane.b32.xlu1 %v4254_v0, %s5260_s26  ;;  %v4053_v4 = vpop.f32.mrb[35].mxu0 }
 0x891   : > { %v4251_v5 = vpop.permute.xlu0 %4250 }
 0x892   : > { %v4253_v8 = vunpack.i.h.bf16 %v4251_v5  ;;  %v4252_v14 = vunpack.i.l.bf16 %v4251_v5 }
 0x894   : > { %v1744_v15 = vsel %vm854_vm1, %v4820_v23, %v4253_v8  ;;  %v1743_v16 = vsel %vm854_vm1, %v4818_v20, %v4252_v14  ;;  %v3744_v20 = vld [vmem:[%s5249_s6] ss:$0 sm:$0xff] }
 0x895   : > { %v1751_v1 = vpack.c.bf16 %v1744_v15, %v1743_v16  ;;  %v3745_v8 = vld [vmem:[%s5250_s7] ss:$0 sm:$0xff] }
 0x897   : > { %4058 = vmatprep.mubr.msk.bf16.mxu1 %vm693_vm15, %v1751_v1 }
 0x8ca   : > { %v4256_v17 = vpop.permute.xlu1 %4255 }
 0x8cb   : > { %v4258_v18 = vunpack.i.h.bf16 %v4256_v17  ;;  %v4257_v12 = vunpack.i.l.bf16 %v4256_v17 }
 0x8cd   : > { %v1746_v19 = vsel %vm854_vm1, %v4824_v31, %v4258_v18  ;;  %v1745_v21 = vsel %vm854_vm1, %v4822_v28, %v4257_v12  ;;  %v3746_v18 = vld [vmem:[%s5251_s8] ss:$0 sm:$0xff] }
 0x8ce   : > { %v1752_v22 = vpack.c.bf16 %v1746_v19, %v1745_v21 }
 0x8d0   : > { %4059 = vmatmul.mubr.msk.bf16.vlgmr.msra.gmra.mrb[32].mxu1 %vm693_vm15, %v1752_v22 }
 0x9a3   : > { %v4060_v26 = vpop.f32.mrb[32].mxu1 }
 0x9a4   : > { %v1805_v23 = vpop.f32.mrb[33].mxu1  ;;  %v1822_v13 = vadd.f32 %v4060_v26, %v4664_v43 }
 0x9a5   : > { %v1820_v49 = vadd.f32 %v1805_v23, %v4659_v35  ;;  %v4061_v24 = vpop.f32.mrb[34].mxu1 }
 0x9a6   : > { %v1808_v46 = vpop.f32.mrb[35].mxu1  ;;  %v4882_v28 = vadd.f32 %v3744_v20, %v1822_v13  ;;  %v1823_v27 = vadd.f32 %v4061_v24, %v4672_v47 }
 0x9a7   : > { %v4879_v25 = vadd.f32 %v3744_v20, %v1820_v49  ;;  %v1821_v31 = vadd.f32 %v1808_v46, %v4667_v45 }
 0x9a8   : > { %v4891_v35 = vadd.f32 %v3744_v20, %v1823_v27  ;;  %v1843_v32 = vsel %vm693_vm15, %v4882_v28, 0.0  ;;  %v4275_v27 = vld [vmem:[%s5254_s11] sm:$0xff]  }
 0x9a9   : > { %v4885_v29 = vadd.f32 %v3744_v20, %v1821_v31  ;;  %v1837_v30 = vsel %vm693_vm15, %v4879_v25, 0.0  ;;  %4070 = vmatprep.subr.bf16.mxu1 %v4275_v27 }
 0x9aa   : > { %1838 = vadd.xlane.f32.xlu0 %v1837_v30  ;;  %v1846_v45 = vsel %vm693_vm15, %v4891_v35, 0.0  ;;  %4071 = vmatpush3.bf16.msra.mxu1 %v4275_v27  ;;  %v4276_v30 = vld [vmem:[%s5254_s11 + $0x8] sm:$0xff]  }
 0x9ab   : > { %v1840_v43 = vsel %vm693_vm15, %v4885_v29, 0.0  ;;  %4072 = vmatprep.subr.bf16.mxu1 %v4276_v30 }
 0x9ac   : > { %1841 = vadd.xlane.f32.xlu1 %v1840_v43  ;;  %v4277_v43 = vld [vmem:[%s5254_s11 + $0x10] sm:$0xff]  }
 0x9ae   : > { %1844 = vadd.xlane.f32.xlu0 %v1843_v32  ;;  %4073 = vmatpush3.bf16.msra.mxu1 %v4276_v30  ;;  %v4278_v32 = vld [vmem:[%s5254_s11 + $0x18] sm:$0xff]  }
 0x9af   : > { %4074 = vmatprep.subr.bf16.mxu1 %v4277_v43 }
 0x9b2   : > { %1847 = vadd.xlane.f32.xlu0 %v1846_v45  ;;  %4075 = vmatpush3.bf16.msra.mxu1 %v4277_v43  ;;  %v3747_v45 = vld [vmem:[%s5253_s10] ss:$0 sm:$0xff] }
 0x9b3   : > { %4076 = vmatprep.subr.bf16.mxu1 %v4278_v32 }
 0x9b6   : > { %4077 = vmatpush3.bf16.msra.mxu1 %v4278_v32 }
 0x9b7   : > { %4096 = vmatprep.subr.bf16.mxu1 %v4447_v41 }
 0xa37   : > { %v1839_v47 = vpop.xlane.xlu0 %1838 }
 0xa38   : > { %v1849_v10 = vmul.f32 0.03125, %v1839_v47 }
 0xa39   : > { %v1842_v6 = vpop.xlane.xlu1 %1841 }
 0xa3a   : > { %v1853_v33 = vsub.f32 %v4879_v25, %v1849_v10  ;;  %v1850_v34 = vmul.f32 0.03125, %v1842_v6 }
 0xa3b   : > { %v1845_v36 = vpop.xlane.xlu0 %1844 }
 0xa3c   : > { %v1854_v7 = vsub.f32 %v4885_v29, %v1850_v34  ;;  %v1851_v37 = vmul.f32 0.03125, %v1845_v36  ;;  %v1857_v38 = vmul.f32 %v1853_v33, %v1853_v33 }
 0xa3e   : > { %v1855_v39 = vsub.f32 %v4882_v28, %v1851_v37  ;;  %v1861_v40 = vsel %vm693_vm15, %v1857_v38, 0.0  ;;  %v1858_v42 = vmul.f32 %v1854_v7, %v1854_v7 }
 0xa3f   : > { %1862 = vadd.xlane.f32.xlu0 %v1861_v40  ;;  %v1848_v44 = vpop.xlane.xlu0 %1847 }
 0xa40   : > { %v1852_v9 = vmul.f32 0.03125, %v1848_v44  ;;  %v1864_v48 = vsel %vm693_vm15, %v1858_v42, 0.0  ;;  %v1859_v50 = vmul.f32 %v1855_v39, %v1855_v39 }
 0xa41   : > { %1865 = vadd.xlane.f32.xlu1 %v1864_v48 }
 0xa42   : > { %v1856_v51 = vsub.f32 %v4891_v35, %v1852_v9  ;;  %v1867_v52 = vsel %vm693_vm15, %v1859_v50, 0.0 }
 0xa43   : > { %1868 = vadd.xlane.f32.xlu0 %v1867_v52 }
 0xa44   : > { %v1860_v11 = vmul.f32 %v1856_v51, %v1856_v51 }
 0xa46   : > { %v1870_v53 = vsel %vm693_vm15, %v1860_v11, 0.0 }
 0xa47   : > { %1871 = vadd.xlane.f32.xlu1 %v1870_v53 }
 0xacc   : > { %v1863_v56 = vpop.xlane.xlu0 %1862 }
 0xacd   : > { %v1873_v57 = vmul.f32 0.03125, %v1863_v56 }
 0xace   : > { %v1866_v58 = vpop.xlane.xlu1 %1865 }
 0xacf   : > { %v1877_v59 = vadd.f32 1e-05, %v1873_v57  ;;  %v1874_v60 = vmul.f32 0.03125, %v1866_v58 }
 0xad0   : > { %v1869_v61 = vpop.xlane.xlu0 %1868 }
 0xad1   : > { %4347 = vrsqrt.f32 %v1877_v59  ;;  %v1878_v62 = vadd.f32 1e-05, %v1874_v60  ;;  %v1875_v63 = vmul.f32 0.03125, %v1869_v61 }
 0xad3   : > { %4349 = vrsqrt.f32 %v1878_v62  ;;  %v1879_v0 = vadd.f32 1e-05, %v1875_v63 }
 0xad4   : > { %v1872_v2 = vpop.xlane.xlu1 %1871 }
 0xad5   : > { %4351 = vrsqrt.f32 %v1879_v0  ;;  %v1876_v3 = vmul.f32 0.03125, %v1872_v2  ;;  %v3758_v2 = vld [vmem:[%s5255_s12] ss:$0 sm:$0xff] }
 0xad7   : > { %v1880_v4 = vadd.f32 1e-05, %v1876_v3 }
 0xad9   : > { %4353 = vrsqrt.f32 %v1880_v4 }
 0xadb   : > { %v4348_v5 = vpop.eup %4347 }
 0xadc   : > { %v1885_v14 = vmul.f32 %v4348_v5, %v1853_v33 }
 0xadd   : > { %v4350_v15 = vpop.eup %4349 }
 0xade   : > { %v1886_v16 = vmul.f32 %v4350_v15, %v1854_v7  ;;  %v1895_v1 = vmul.f32 %v3745_v8, %v1885_v14 }
 0xadf   : > { %v4352_v17 = vpop.eup %4351 }
 0xae0   : > { %v1887_v12 = vmul.f32 %v4352_v17, %v1855_v39  ;;  %v1896_v19 = vmul.f32 %v3745_v8, %v1886_v16  ;;  %v1905_v21 = vadd.f32 %v3746_v18, %v1895_v1 }
 0xae2   : > { %v1906_v22 = vadd.f32 %v3746_v18, %v1896_v19  ;;  %v1897_v20 = vmul.f32 %v3745_v8, %v1887_v12 }
 0xae3   : > { %v4354_v26 = vpop.eup %4353 }
 0xae4   : > { %v1888_v23 = vmul.f32 %v4354_v26, %v1856_v51  ;;  %v1913_v13 = vpack.c.bf16 %v1906_v22, %v1905_v21  ;;  %v1907_v24 = vadd.f32 %v3746_v18, %v1897_v20 }
 0xae6   : > { %v1898_v49 = vmul.f32 %v3745_v8, %v1888_v23  ;;  %4066 = vmatprep.mubr.msk.bf16.mxu0 %vm693_vm15, %v1913_v13 }
 0xae8   : > { %v1908_v46 = vadd.f32 %v3746_v18, %v1898_v49 }
 0xaea   : > { %v1914_v31 = vpack.c.bf16 %v1908_v46, %v1907_v24 }
 0xaec   : > { %4067 = vmatmul.mubr.msk.bf16.vlgmr.msra.gmra.mrb[36].mxu0 %vm693_vm15, %v1914_v31 }
 0xbbf   : > { %v4068_v47 = vpop.f32.mrb[36].mxu0 }
 0xbc0   : > { %v1983_v10 = vadd.f32 %v4068_v47, %v3747_v45  ;;  %v1974_v6 = vpop.f32.mrb[37].mxu0 }
 0xbc1   : > { %v1975_v33 = vadd.f32 %v3747_v45, %v1974_v6  ;;  %v4069_v34 = vpop.f32.mrb[38].mxu0 }
 0xbc2   : > { %v1995_v36 = vmul.f32 0.70710677, %v1983_v10  ;;  %v1986_v7 = vadd.f32 %v4069_v34, %v3747_v45  ;;  %v1977_v37 = vpop.f32.mrb[39].mxu0  ;;  %v1991_v11 = vmul.f32 0.5, %v1983_v10  ;;  %v4279_v34 = vld [vmem:[%s5247_s4 + $0x10] sm:$0xff]  }
 0xbc3   : > { %v1993_v38 = vmul.f32 0.70710677, %v1975_v33  ;;  %v1978_v39 = vadd.f32 %v3747_v45, %v1977_v37  ;;  %v1989_v55 = vmul.f32 0.5, %v1975_v33  ;;  %4082 = vmatprep.subr.bf16.mxu0 %v4279_v34 }
 0xbc4   : > { %4355 = verf.f32 %v1995_v36  ;;  %v1996_v40 = vmul.f32 0.70710677, %v1986_v7  ;;  %v1992_v53 = vmul.f32 0.5, %v1986_v7  ;;  %4083 = vmatpush3.bf16.msra.mxu0 %v4279_v34  ;;  %v4280_v36 = vld [vmem:[%s5247_s4 + $0x18] sm:$0xff]  }
 0xbc5   : > { %4357 = verf.f32 %v1993_v38  ;;  %v1994_v42 = vmul.f32 0.70710677, %v1978_v39  ;;  %v1990_v56 = vmul.f32 0.5, %v1978_v39  ;;  %4084 = vmatprep.subr.bf16.mxu0 %v4280_v36 }
 0xbc6   : > { %4359 = verf.f32 %v1996_v40 }
 0xbc7   : > { %4361 = verf.f32 %v1994_v42 }
 0xbc8   : > { %4085 = vmatpush3.bf16.msra.mxu0 %v4280_v36 }
 0xbc9   : > { %4090 = vmatprep.subr.bf16.mxu0 %v4447_v41 }
 0xbce   : > { %v4356_v44 = vpop.eup %4355 }
 0xbcf   : > { %v4358_v9 = vpop.eup %4357  ;;  %v2003_v48 = vadd.f32 1.0, %v4356_v44 }
 0xbd0   : > { %v4360_v50 = vpop.eup %4359  ;;  %v2001_v51 = vadd.f32 1.0, %v4358_v9 }
 0xbd1   : > { %v4362_v52 = vpop.eup %4361  ;;  %v2004_v54 = vadd.f32 1.0, %v4360_v50  ;;  %v2007_v58 = vmul.f32 %v2003_v48, %v1991_v11 }
 0xbd2   : > { %v2002_v57 = vadd.f32 1.0, %v4362_v52  ;;  %v2005_v60 = vmul.f32 %v2001_v51, %v1989_v55 }
 0xbd3   : > { %v2008_v59 = vmul.f32 %v2004_v54, %v1992_v53  ;;  %v3761_v53 = vld [vmem:[%s5245_s2 + $0x1] ss:$0 sm:$0xff] }
 0xbd4   : > { %v2006_v61 = vmul.f32 %v2002_v57, %v1990_v56 }
 0xbd5   : > { %v2018_v62 = vpack.c.bf16 %v2008_v59, %v2007_v58  ;;  %v3762_v59 = vld [vmem:[%s5246_s3 + $0x1] ss:$0 sm:$0xff] }
 0xbd6   : > { %v2017_v63 = vpack.c.bf16 %v2006_v61, %v2005_v60 }
 0xbd8   : > { %4078 = vmatprep.mubr.msk.bf16.mxu1 %vm2043_vm4, %v2017_v63 }
 0xbd9   : > { %4079 = vmatmul.mubr.msk.bf16.vlgmr.msra.gmra.mrb[36].mxu1 %vm2043_vm4, %v2018_v62 }
 0xbda   : > { %4098 = vmatprep.mubr.msk.bf16.mxu1 %vm4448_vm0, %v4447_v41 }
 0xcac   : > { %v4080_v0 = vpop.f32.mrb[36].mxu1 }
 0xcad   : > { %v2084_v3 = vpop.f32.mrb[37].mxu1  ;;  %v2101_v4 = vadd.f32 %v4080_v0, %v4882_v28 }
 0xcae   : > { %v2099_v5 = vadd.f32 %v2084_v3, %v4879_v25  ;;  %v4081_v8 = vpop.f32.mrb[38].mxu1 }
 0xcaf   : > { %v2087_v14 = vpop.f32.mrb[39].mxu1  ;;  %v2102_v16 = vadd.f32 %v4081_v8, %v4891_v35  ;;  %v4948_v17 = vadd.f32 %v3758_v2, %v2101_v4 }
 0xcb0   : > { %v4944_v15 = vadd.f32 %v3758_v2, %v2099_v5  ;;  %v2100_v1 = vadd.f32 %v2087_v14, %v4885_v29 }
 0xcb1   : > { %v4954_v19 = vadd.f32 %v3758_v2, %v2102_v16  ;;  %v2124_v28 = vsel %vm693_vm15, %v4948_v17, 0.0 }
 0xcb2   : > { %v4950_v18 = vadd.f32 %v3758_v2, %v2100_v1  ;;  %v2118_v12 = vsel %vm693_vm15, %v4944_v15, 0.0 }
 0xcb3   : > { %2119 = vadd.xlane.f32.xlu0 %v2118_v12  ;;  %v2127_v29 = vsel %vm693_vm15, %v4954_v19, 0.0 }
 0xcb4   : > { %v2121_v25 = vsel %vm693_vm15, %v4950_v18, 0.0 }
 0xcb5   : > { %2122 = vadd.xlane.f32.xlu1 %v2121_v25 }
 0xcb7   : > { %2125 = vadd.xlane.f32.xlu0 %v2124_v28 }
 0xcb9   : > { %2128 = vadd.xlane.f32.xlu1 %v2127_v29 }
 0xd40   : > { %v2120_v35 = vpop.xlane.xlu0 %2119 }
 0xd41   : > { %v2130_v21 = vmul.f32 0.03125, %v2120_v35 }
 0xd42   : > { %v2123_v22 = vpop.xlane.xlu1 %2122 }
 0xd43   : > { %v2134_v26 = vsub.f32 %v4944_v15, %v2130_v21  ;;  %v2131_v20 = vmul.f32 0.03125, %v2123_v22 }
 0xd44   : > { %v2126_v23 = vpop.xlane.xlu0 %2125 }
 0xd45   : > { %v2135_v13 = vsub.f32 %v4950_v18, %v2131_v20  ;;  %v2132_v49 = vmul.f32 0.03125, %v2126_v23  ;;  %v2138_v24 = vmul.f32 %v2134_v26, %v2134_v26 }
 0xd46   : > { %v2129_v46 = vpop.xlane.xlu1 %2128 }
 0xd47   : > { %v2136_v31 = vsub.f32 %v4948_v17, %v2132_v49  ;;  %v2133_v27 = vmul.f32 0.03125, %v2129_v46  ;;  %v2142_v30 = vsel %vm693_vm15, %v2138_v24, 0.0  ;;  %v2139_v43 = vmul.f32 %v2135_v13, %v2135_v13 }
 0xd48   : > { %2143 = vadd.xlane.f32.xlu0 %v2142_v30 }
 0xd49   : > { %v2137_v32 = vsub.f32 %v4954_v19, %v2133_v27  ;;  %v2145_v45 = vsel %vm693_vm15, %v2139_v43, 0.0  ;;  %v2140_v47 = vmul.f32 %v2136_v31, %v2136_v31 }
 0xd4a   : > { %2146 = vadd.xlane.f32.xlu1 %v2145_v45 }
 0xd4b   : > { %v2148_v10 = vsel %vm693_vm15, %v2140_v47, 0.0  ;;  %v2141_v6 = vmul.f32 %v2137_v32, %v2137_v32 }
 0xd4c   : > { %2149 = vadd.xlane.f32.xlu0 %v2148_v10 }
 0xd4d   : > { %v2151_v33 = vsel %vm693_vm15, %v2141_v6, 0.0 }
 0xd4e   : > { %2152 = vadd.xlane.f32.xlu1 %v2151_v33 }
 0xdd5   : > { %v2144_v7 = vpop.xlane.xlu0 %2143 }
 0xdd6   : > { %v2154_v37 = vmul.f32 0.03125, %v2144_v7 }
 0xdd7   : > { %v2147_v38 = vpop.xlane.xlu1 %2146 }
 0xdd8   : > { %v2158_v39 = vadd.f32 1e-05, %v2154_v37  ;;  %v2155_v40 = vmul.f32 0.03125, %v2147_v38 }
 0xdd9   : > { %v2150_v42 = vpop.xlane.xlu0 %2149 }
 0xdda   : > { %4363 = vrsqrt.f32 %v2158_v39  ;;  %v2159_v44 = vadd.f32 1e-05, %v2155_v40  ;;  %v2156_v9 = vmul.f32 0.03125, %v2150_v42 }
 0xddb   : > { %v2153_v48 = vpop.xlane.xlu1 %2152 }
 0xddc   : > { %4365 = vrsqrt.f32 %v2159_v44  ;;  %v2160_v50 = vadd.f32 1e-05, %v2156_v9  ;;  %v2157_v51 = vmul.f32 0.03125, %v2153_v48 }
 0xdde   : > { %4367 = vrsqrt.f32 %v2160_v50  ;;  %v2161_v52 = vadd.f32 1e-05, %v2157_v51 }
 0xde0   : > { %4369 = vrsqrt.f32 %v2161_v52 }
 0xde4   : > { %v4364_v11 = vpop.eup %4363 }
 0xde5   : > { %v2166_v54 = vmul.f32 %v4364_v11, %v2134_v26 }
 0xde6   : > { %v4366_v55 = vpop.eup %4365 }
 0xde7   : > { %v2167_v56 = vmul.f32 %v4366_v55, %v2135_v13  ;;  %v2176_v57 = vmul.f32 %v3761_v53, %v2166_v54 }
 0xde8   : > { %v4368_v58 = vpop.eup %4367 }
 0xde9   : > { %v2168_v60 = vmul.f32 %v4368_v58, %v2136_v31  ;;  %v2177_v61 = vmul.f32 %v3761_v53, %v2167_v56  ;;  %v2186_v2 = vadd.f32 %v3762_v59, %v2176_v57 }
 0xdea   : > { %v4370_v62 = vpop.eup %4369 }
 0xdeb   : > { %v2178_v63 = vmul.f32 %v3761_v53, %v2168_v60  ;;  %v2169_v0 = vmul.f32 %v4370_v62, %v2137_v32  ;;  %v2187_v3 = vadd.f32 %v3762_v59, %v2177_v61 }
 0xded   : > { %v2179_v4 = vmul.f32 %v3761_v53, %v2169_v0  ;;  %v2195_v5 = vpack.c.bf16 %v2187_v3, %v2186_v2  ;;  %v2188_v8 = vadd.f32 %v3762_v59, %v2178_v63 }
 0xdef   : > { %4086 = vmatprep.mubr.msk.bf16.mxu0 %vm693_vm15, %v2195_v5  ;;  %v2189_v14 = vadd.f32 %v3762_v59, %v2179_v4 }
 0xdf1   : > { %v2196_v16 = vpack.c.bf16 %v2189_v14, %v2188_v8 }
 0xdf3   : > { %4087 = vmatmul.mubr.msk.bf16.vlgmr.msra.gmra.mrb[40].mxu0 %vm693_vm15, %v2196_v16 }
 0xdf4   : > { %4092 = vmatprep.mubr.msk.bf16.mxu0 %vm4448_vm0, %v4447_v41 }
 0xec6   : > { %v4088_v1 = vpop.f32.mrb[40].mxu0 }
 0xec7   : > { %v2249_v12 = vpop.f32.mrb[41].mxu0  ;;  %v4995_v21 = vpack.c.bf16 %v4088_v1, %v4088_v1 }
 0xec8   : > { %v4987_v25 = vpack.c.bf16 %v2249_v12, %v2249_v12  ;;  %v4089_v28 = vpop.f32.mrb[42].mxu0 }
 0xec9   : > { %v2252_v29 = vpop.f32.mrb[43].mxu0  ;;  %v4999_v22 = vpack.c.bf16 %v4089_v28, %v4089_v28 }
 0xeca   : > { %v4989_v35 = vpack.c.bf16 %v2252_v29, %v2252_v29  ;;  %2276 = vrot.lane.b32.xlu0 %v4987_v25, %s4449_s17 }
 0xecc   : > { %2324 = vrot.lane.b32.xlu1 %v4989_v35, %s4449_s17 }
 0xed0   : > { %2372 = vrot.lane.b32.xlu1 %v4995_v21, %s4449_s17 }
 0xed4   : > { %2420 = vrot.lane.b32.xlu1 %v4999_v22, %s4449_s17 }
 0xf3c   : > { %v2277_v26 = vpop.permute.xlu0 %2276 }
 0xf3d   : > { %v2282_v20 = vsel %vm854_vm1, %v2277_v26, 0 }
 0xf3e   : > { %4091 = vmatpush3.bf16.xpose.msra.mxu0 %v2282_v20  ;;  %v2325_v23 = vpop.permute.xlu1 %2324 }
 0xf3f   : > { %v2330_v13 = vsel %vm854_vm1, %v2325_v23, 0  ;;  %4102 = vmatprep.subr.bf16.mxu0 %v4447_v41 }
 0xf40   : > { %4097 = vmatpush3.bf16.xpose.msra.mxu1 %v2330_v13 }
 0xf41   : > { %4108 = vmatprep.subr.bf16.mxu1 %v4447_v41 }
 0xf42   : > { %v2373_v49 = vpop.permute.xlu1 %2372 }
 0xf43   : > { %v2378_v24 = vsel %vm854_vm1, %v2373_v49, 0 }
 0xf45   : > { %4093 = vmatmul.mubr.msk.bf16.vlgmr.msra.gmra.mrb[44].mxu0 %vm854_vm1, %v4987_v25 }
 0xf46   : > { %4103 = vmatpush3.bf16.xpose.msra.mxu0 %v2378_v24  ;;  %v2421_v46 = vpop.permute.xlu1 %2420  ;;  %4104 = vmatprep.mubr.msk.bf16.mxu0 %vm4448_vm0, %v4447_v41 }
 0xf47   : > { %v2426_v31 = vsel %vm854_vm1, %v2421_v46, 0  ;;  %4099 = vmatmul.mubr.msk.bf16.vlgmr.msra.gmra.mrb[40].mxu1 %vm854_vm1, %v4989_v35  ;;  %4114 = vmatprep.subr.bf16.mxu0 %v4447_v41 }
 0xf48   : > { %4109 = vmatpush3.bf16.xpose.msra.mxu1 %v2426_v31  ;;  %4110 = vmatprep.mubr.msk.bf16.mxu1 %vm4448_vm0, %v4447_v41 }
 0xf49   : > { %4120 = vmatprep.subr.bf16.mxu1 %v4447_v41 }
 0xf4d   : > { %4105 = vmatmul.mubr.msk.bf16.vlgmr.msra.gmra.mrb[48].mxu0 %vm854_vm1, %v4995_v21 }
 0xf4e   : > { %4116 = vmatprep.mubr.msk.bf16.mxu0 %vm4448_vm0, %v4447_v41 }
 0xf4f   : > { %4111 = vmatmul.mubr.msk.bf16.vlgmr.msra.gmra.mrb[44].mxu1 %vm854_vm1, %v4999_v22 }
 0xf50   : > { %4122 = vmatprep.mubr.msk.bf16.mxu1 %vm4448_vm0, %v4447_v41 }
0x1018   : > { %v2318_v27 = vpop.f32.mrb[44].mxu0 }
0x1019   : > { %v4094_v30 = vpop.f32.mrb[45].mxu0  ;;  %v2468_v43 = vsel %vm1045_vm2, %v2318_v27, -inf }
0x101a   : > { %2469 = vmax.xlane.f32.xlu0 %v2468_v43  ;;  %v2321_v32 = vpop.f32.mrb[46].mxu0  ;;  %v2366_v45 = vpop.f32.mrb[40].mxu1 }
0x101b   : > { %v4095_v47 = vpop.f32.mrb[47].mxu0  ;;  %v4100_v10 = vpop.f32.mrb[41].mxu1  ;;  %v2471_v6 = vsel %vm1045_vm2, %v2366_v45, -inf }
0x101c   : > { %2472 = vmax.xlane.f32.xlu1 %v2471_v6  ;;  %v2369_v33 = vpop.f32.mrb[42].mxu1 }
0x101d   : > { %v4101_v34 = vpop.f32.mrb[43].mxu1 }
0x1020   : > { %v2414_v36 = vpop.f32.mrb[48].mxu0 }
0x1021   : > { %v4106_v7 = vpop.f32.mrb[49].mxu0  ;;  %v2474_v37 = vsel %vm1045_vm2, %v2414_v36, -inf }
0x1022   : > { %2475 = vmax.xlane.f32.xlu0 %v2474_v37  ;;  %v2417_v38 = vpop.f32.mrb[50].mxu0  ;;  %v2462_v39 = vpop.f32.mrb[44].mxu1 }
0x1023   : > { %v4107_v40 = vpop.f32.mrb[51].mxu0  ;;  %v4112_v42 = vpop.f32.mrb[45].mxu1  ;;  %v2477_v48 = vsel %vm1045_vm2, %v2462_v39, -inf }
0x1024   : > { %v2465_v44 = vpop.f32.mrb[46].mxu1 }
0x1025   : > { %v4113_v9 = vpop.f32.mrb[47].mxu1 }
0x1026   : > { %2478 = vmax.xlane.f32.xlu0 %v2477_v48 }
0x102d   : > { %2564 = vrot.lane.b32.xlu1 %v4989_v35, %s4450_s20 }
0x1031   : > { %2612 = vrot.lane.b32.xlu1 %v4995_v21, %s4450_s20 }
0x1035   : > { %2660 = vrot.lane.b32.xlu1 %v4999_v22, %s4450_s20 }
0x10a7   : > { %v2470_v50 = vpop.xlane.xlu0 %2469 }
0x10a8   : > { %v2480_v51 = vsub.f32 %v2318_v27, %v2470_v50 }
0x10a9   : > { %v2473_v52 = vpop.xlane.xlu1 %2472 }
0x10aa   : > { %v2484_v11 = vmul.f32 1.442695, %v2480_v51  ;;  %v2481_v53 = vsub.f32 %v2366_v45, %v2473_v52 }
0x10ac   : > { %4371 = vpow2.f32 %v2484_v11  ;;  %v2486_v54 = vmul.f32 1.442695, %v2481_v53 }
0x10ad   : > { %v2565_v55 = vpop.permute.xlu1 %2564 }
0x10ae   : > { %4373 = vpow2.f32 %v2486_v54  ;;  %v2570_v56 = vsel %vm1099_vm3, %v2565_v55, 0 }
0x10af   : > { %4121 = vmatpush3.bf16.msra.mxu1 %v2570_v56  ;;  %v2476_v61 = vpop.xlane.xlu0 %2475 }
0x10b0   : > { %4132 = vmatprep.subr.bf16.mxu1 %v4447_v41  ;;  %v2482_v63 = vsub.f32 %v2414_v36, %v2476_v61 }
0x10b1   : > { %v2613_v16 = vpop.permute.xlu1 %2612 }
0x10b2   : > { %v2488_v2 = vmul.f32 1.442695, %v2482_v63  ;;  %v2618_v46 = vsel %vm1099_vm3, %v2613_v16, 0 }
0x10b3   : > { %v2479_v62 = vpop.xlane.xlu0 %2478 }
0x10b4   : > { %v2483_v0 = vsub.f32 %v2462_v39, %v2479_v62  ;;  %4375 = vpow2.f32 %v2488_v2 }
0x10b5   : > { %v2661_v1 = vpop.permute.xlu1 %2660 }
0x10b6   : > { %v4372_v57 = vpop.eup %4371  ;;  %v2490_v3 = vmul.f32 1.442695, %v2483_v0  ;;  %v2666_v27 = vsel %vm1099_vm3, %v2661_v1, 0 }
0x10b7   : > { %v2492_v58 = vsel %vm1045_vm2, %v4372_v57, 0.0 }
0x10b8   : > { %v4374_v59 = vpop.eup %4373  ;;  %2493 = vadd.xlane.f32.xlu0 %v2492_v58  ;;  %4377 = vpow2.f32 %v2490_v3 }
0x10b9   : > { %v2495_v60 = vsel %vm1045_vm2, %v4374_v59, 0.0 }
0x10ba   : > { %2496 = vadd.xlane.f32.xlu1 %v2495_v60 }
0x10be   : > { %v4376_v4 = vpop.eup %4375 }
0x10bf   : > { %v2498_v8 = vsel %vm1045_vm2, %v4376_v4, 0.0 }
0x10c2   : > { %v4378_v5 = vpop.eup %4377 }
0x10c3   : > { %v2501_v14 = vsel %vm1045_vm2, %v4378_v5, 0.0 }
0x10cb   : > { %2760 = vrot.lane.b32.xlu1 %v4989_v35, %s4451_s21 }
0x10ce   : > { %2516 = vrot.lane.b32.xlu0 %v4987_v25, %s4450_s20 }
0x10ed   : > { %2499 = vadd.xlane.f32.xlu0 %v2498_v8 }
0x10ef   : > { %2502 = vadd.xlane.f32.xlu1 %v2501_v14 }
0x1100   : > { %2758 = vrot.lane.b32.xlu1 %v4989_v35, %s4452_s22 }
0x1103   : > { %2710 = vrot.lane.b32.xlu0 %v4987_v25, %s4451_s21 }
0x1104   : > { %2860 = vrot.lane.b32.xlu1 %v4999_v22, %s4451_s21 }
0x1107   : > { %2708 = vrot.lane.b32.xlu0 %v4987_v25, %s4452_s22 }
0x1108   : > { %2858 = vrot.lane.b32.xlu1 %v4999_v22, %s4452_s22 }
0x110b   : > { %2810 = vrot.lane.b32.xlu0 %v4995_v21, %s4451_s21  ;;  %s5264_s21 = smov 16  }
0x110f   : > { %2808 = vrot.lane.b32.xlu0 %v4995_v21, %s4452_s22 }
0x1145   : > { %v2494_v12 = vpop.xlane.xlu0 %2493 }
0x1146   : > { %4379 = vrcp.f32 %v2494_v12 }
0x1147   : > { %v2497_v28 = vpop.xlane.xlu1 %2496 }
0x1148   : > { %4381 = vrcp.f32 %v2497_v28 }
0x1149   : > { %v2517_v29 = vpop.permute.xlu0 %2516 }
0x114a   : > { %v2522_v26 = vsel %vm1099_vm3, %v2517_v29, 0 }
0x114b   : > { %4115 = vmatpush3.bf16.msra.mxu0 %v2522_v26  ;;  %v2761_v30 = vpop.permute.xlu1 %2760 }
0x114c   : > { %4126 = vmatprep.subr.bf16.mxu0 %v4447_v41  ;;  %v2766_v39 = vsel %vm854_vm1, %v2761_v30, 0 }
0x1150   : > { %v4380_v20 = vpop.eup %4379 }
0x1151   : > { %v2508_v23 = vmul.f32 %v4380_v20, %v4372_v57 }
0x1152   : > { %v4382_v13 = vpop.eup %4381 }
0x1153   : > { %v2509_v49 = vmul.f32 %v4382_v13, %v4374_v59  ;;  %v2512_v24 = vpack.c.bf16 %v2508_v23, %v2508_v23 }
0x1155   : > { %4117 = vmatmul.mubr.msk.bf16.vlgmr.msra.gmra.mrb[52].mxu0 %vm1045_vm2, %v2512_v24  ;;  %v2513_v31 = vpack.c.bf16 %v2509_v49, %v2509_v49 }
0x1156   : > { %4127 = vmatpush3.bf16.msra.mxu0 %v2618_v46  ;;  %4128 = vmatprep.mubr.msk.bf16.mxu0 %vm4448_vm0, %v4447_v41 }
0x1157   : > { %4123 = vmatmul.mubr.msk.bf16.vlgmr.msra.gmra.mrb[48].mxu1 %vm1045_vm2, %v2513_v31  ;;  %4138 = vmatprep.subr.bf16.mxu0 %v4447_v41 }
0x1158   : > { %4133 = vmatpush3.bf16.msra.mxu1 %v2666_v27  ;;  %4134 = vmatprep.mubr.msk.bf16.mxu1 %vm4448_vm0, %v4447_v41 }
0x1159   : > { %4144 = vmatprep.subr.bf16.mxu1 %v4447_v41 }
0x117a   : > { %v2500_v43 = vpop.xlane.xlu0 %2499 }
0x117b   : > { %4383 = vrcp.f32 %v2500_v43 }
0x117c   : > { %v2503_v32 = vpop.xlane.xlu1 %2502 }
0x117d   : > { %4385 = vrcp.f32 %v2503_v32 }
0x117e   : > { %v2711_v45 = vpop.permute.xlu0 %2710 }
0x117f   : > { %v2716_v7 = vsel %vm854_vm1, %v2711_v45, 0 }
0x1180   : > { %v2759_v38 = vpop.permute.xlu1 %2758 }
0x1182   : > { %v2709_v36 = vpop.permute.xlu0 %2708 }
0x1184   : > { %v2861_v42 = vpop.permute.xlu1 %2860 }
0x1185   : > { %v4384_v47 = vpop.eup %4383  ;;  %v2866_v9 = vsel %vm854_vm1, %v2861_v42, 0 }
0x1186   : > { %v2510_v10 = vmul.f32 %v4384_v47, %v4376_v4  ;;  %v2811_v40 = vpop.permute.xlu0 %2810 }
0x1187   : > { %v4386_v6 = vpop.eup %4385  ;;  %v2816_v44 = vsel %vm854_vm1, %v2811_v40, 0 }
0x1188   : > { %v2511_v33 = vmul.f32 %v4386_v6, %v4378_v5  ;;  %v2514_v34 = vpack.c.bf16 %v2510_v10, %v2510_v10  ;;  %v2859_v50 = vpop.permute.xlu1 %2858 }
0x118a   : > { %4129 = vmatmul.mubr.msk.bf16.vlgmr.msra.gmra.mrb[56].mxu0 %vm1045_vm2, %v2514_v34  ;;  %v2515_v37 = vpack.c.bf16 %v2511_v33, %v2511_v33  ;;  %v2809_v48 = vpop.permute.xlu0 %2808 }
0x118b   : > { %4139 = vmatpush3.bf16.xpose.msra.mxu0 %v2716_v7  ;;  %4140 = vmatprep.mubr.msk.bf16.mxu0 %vm4448_vm0, %v4447_v41 }
0x118c   : > { %4135 = vmatmul.mubr.msk.bf16.vlgmr.msra.gmra.mrb[52].mxu1 %vm1045_vm2, %v2515_v37  ;;  %4150 = vmatprep.subr.bf16.mxu0 %v4447_v41 }
0x118d   : > { %4145 = vmatpush3.bf16.xpose.msra.mxu1 %v2766_v39  ;;  %4146 = vmatprep.mubr.msk.bf16.mxu1 %vm4448_vm0, %v4447_v41 }
0x118e   : > { %4156 = vmatprep.subr.bf16.mxu1 %v4447_v41 }
0x1192   : > { %4141 = vmatmul.mubr.msk.bf16.vlgmr.msra.gmra.mrb[60].mxu0 %vm854_vm1, %v2709_v36 }
0x1193   : > { %4151 = vmatpush3.bf16.xpose.msra.mxu0 %v2816_v44  ;;  %4152 = vmatprep.mubr.msk.bf16.mxu0 %vm4448_vm0, %v4447_v41 }
0x1194   : > { %4147 = vmatmul.mubr.msk.bf16.vlgmr.msra.gmra.mrb[56].mxu1 %vm854_vm1, %v2759_v38  ;;  %4162 = vmatprep.subr.bf16.mxu0 %v4447_v41 }
0x1195   : > { %4157 = vmatpush3.bf16.xpose.msra.mxu1 %v2866_v9  ;;  %4158 = vmatprep.mubr.msk.bf16.mxu1 %vm4448_vm0, %v4447_v41 }
0x1196   : > { %4168 = vmatprep.subr.bf16.mxu1 %v4447_v41 }
0x119a   : > { %4153 = vmatmul.mubr.msk.bf16.vlgmr.msra.gmra.mrb[64].mxu0 %vm854_vm1, %v2809_v48 }
0x119b   : > { %4164 = vmatprep.mubr.msk.bf16.mxu0 %vm4448_vm0, %v4447_v41 }
0x119c   : > { %4159 = vmatmul.mubr.msk.bf16.vlgmr.msra.gmra.mrb[60].mxu1 %vm854_vm1, %v2859_v50 }
0x119d   : > { %4170 = vmatprep.mubr.msk.bf16.mxu1 %vm4448_vm0, %v4447_v41 }
0x1228   : > { %v5099_v51 = vpop.f32.mrb[52].mxu0 }
0x1229   : > { %v4118_v52 = vpop.f32.mrb[53].mxu0 }
0x122a   : > { %v2561_v11 = vpop.f32.mrb[54].mxu0  ;;  %v5101_v53 = vpop.f32.mrb[48].mxu1 }
0x122b   : > { %v4119_v54 = vpop.f32.mrb[55].mxu0  ;;  %v4124_v55 = vpop.f32.mrb[49].mxu1 }
0x122c   : > { %v2609_v56 = vpop.f32.mrb[50].mxu1 }
0x122d   : > { %v4125_v57 = vpop.f32.mrb[51].mxu1 }
0x125d   : > { %v5103_v58 = vpop.f32.mrb[56].mxu0 }
0x125e   : > { %v4130_v59 = vpop.f32.mrb[57].mxu0 }
0x125f   : > { %v2657_v60 = vpop.f32.mrb[58].mxu0  ;;  %v5105_v61 = vpop.f32.mrb[52].mxu1 }
0x1260   : > { %v4131_v62 = vpop.f32.mrb[59].mxu0  ;;  %v4136_v63 = vpop.f32.mrb[53].mxu1 }
0x1261   : > { %v2705_v0 = vpop.f32.mrb[54].mxu1 }
0x1262   : > { %v4137_v2 = vpop.f32.mrb[55].mxu1 }
0x1265   : > { %v2752_v3 = vpop.f32.mrb[60].mxu0 }
0x1266   : > { %v4142_v4 = vpop.f32.mrb[61].mxu0  ;;  %v2908_v5 = vsel %vm1045_vm2, %v2752_v3, -inf }
0x1267   : > { %2909 = vmax.xlane.f32.xlu0 %v2908_v5  ;;  %v2755_v8 = vpop.f32.mrb[62].mxu0  ;;  %v2802_v14 = vpop.f32.mrb[56].mxu1 }
0x1268   : > { %v4143_v16 = vpop.f32.mrb[63].mxu0  ;;  %v4148_v1 = vpop.f32.mrb[57].mxu1  ;;  %v2911_v12 = vsel %vm1045_vm2, %v2802_v14, -inf }
0x1269   : > { %2912 = vmax.xlane.f32.xlu1 %v2911_v12  ;;  %v2805_v28 = vpop.f32.mrb[58].mxu1 }
0x126a   : > { %v4149_v29 = vpop.f32.mrb[59].mxu1 }
0x126b   : > { %v4281_v29 = vld [vmem:[%s5248_s5 + $0x10] sm:$0xff]  }
0x126d   : > { %v2852_v26 = vpop.f32.mrb[64].mxu0 }
0x126e   : > { %v4154_v20 = vpop.f32.mrb[65].mxu0  ;;  %v2914_v23 = vsel %vm1045_vm2, %v2852_v26, -inf }
0x126f   : > { %2915 = vmax.xlane.f32.xlu0 %v2914_v23  ;;  %v2855_v13 = vpop.f32.mrb[66].mxu0  ;;  %v2902_v49 = vpop.f32.mrb[60].mxu1 }
0x1270   : > { %v4155_v24 = vpop.f32.mrb[67].mxu0  ;;  %v4160_v46 = vpop.f32.mrb[61].mxu1  ;;  %v2917_v30 = vsel %vm1045_vm2, %v2902_v49, -inf }
0x1271   : > { %v2905_v31 = vpop.f32.mrb[62].mxu1 }
0x1272   : > { %v4161_v27 = vpop.f32.mrb[63].mxu1 }
0x1273   : > { %2918 = vmax.xlane.f32.xlu0 %v2917_v30 }
0x12f4   : > { %v2910_v43 = vpop.xlane.xlu0 %2909 }
0x12f5   : > { %v2920_v32 = vsub.f32 %v2752_v3, %v2910_v43 }
0x12f6   : > { %v2913_v45 = vpop.xlane.xlu1 %2912 }
0x12f7   : > { %v2924_v47 = vmul.f32 1.442695, %v2920_v32  ;;  %v2921_v10 = vsub.f32 %v2802_v14, %v2913_v45  ;;  %v4282_v45 = vld [vmem:[%s5248_s5 + $0x18] sm:$0xff]  }
0x12f9   : > { %4387 = vpow2.f32 %v2924_v47  ;;  %v2926_v6 = vmul.f32 1.442695, %v2921_v10 }
0x12fb   : > { %4389 = vpow2.f32 %v2926_v6 }
0x12fc   : > { %v2916_v33 = vpop.xlane.xlu0 %2915 }
0x12fd   : > { %v2922_v34 = vsub.f32 %v2852_v26, %v2916_v33 }
0x12ff   : > { %v2928_v36 = vmul.f32 1.442695, %v2922_v34 }
0x1300   : > { %v2919_v44 = vpop.xlane.xlu0 %2918 }
0x1301   : > { %4391 = vpow2.f32 %v2928_v36  ;;  %v2923_v9 = vsub.f32 %v2902_v49, %v2919_v44 }
0x1303   : > { %v4388_v7 = vpop.eup %4387  ;;  %v2930_v48 = vmul.f32 1.442695, %v2923_v9 }
0x1304   : > { %v2932_v37 = vsel %vm1045_vm2, %v4388_v7, 0.0 }
0x1305   : > { %v4390_v38 = vpop.eup %4389  ;;  %2933 = vadd.xlane.f32.xlu0 %v2932_v37  ;;  %4393 = vpow2.f32 %v2930_v48 }
0x1306   : > { %v2935_v39 = vsel %vm1045_vm2, %v4390_v38, 0.0 }
0x1307   : > { %2936 = vadd.xlane.f32.xlu1 %v2935_v39 }
0x130b   : > { %v4392_v40 = vpop.eup %4391 }
0x130c   : > { %v2938_v42 = vsel %vm1045_vm2, %v4392_v40, 0.0 }
0x130d   : > { %2939 = vadd.xlane.f32.xlu0 %v2938_v42 }
0x130f   : > { %v4394_v50 = vpop.eup %4393 }
0x1310   : > { %v2941_v52 = vsel %vm1045_vm2, %v4394_v50, 0.0 }
0x1318   : > { %3004 = vrot.lane.b32.xlu1 %v4989_v35, %s4453_s23 }
0x131c   : > { %3052 = vrot.lane.b32.xlu1 %v4995_v21, %s4453_s23 }
0x1323   : > { %2956 = vrot.lane.b32.xlu0 %v4987_v25, %s4453_s23 }
0x1340   : > { %2942 = vadd.xlane.f32.xlu1 %v2941_v52 }
0x1351   : > { %3100 = vrot.lane.b32.xlu1 %v4999_v22, %s4453_s23 }
0x1392   : > { %v2934_v11 = vpop.xlane.xlu0 %2933 }
0x1393   : > { %4395 = vrcp.f32 %v2934_v11 }
0x1394   : > { %v2937_v35 = vpop.xlane.xlu1 %2936 }
0x1395   : > { %4397 = vrcp.f32 %v2937_v35 }
0x1398   : > { %v3005_v54 = vpop.permute.xlu1 %3004 }
0x1399   : > { %v3010_v21 = vsel %vm1099_vm3, %v3005_v54, 0 }
0x139a   : > { %v2940_v55 = vpop.xlane.xlu0 %2939  ;;  %4169 = vmatpush3.bf16.msra.mxu1 %v3010_v21 }
0x139b   : > { %4399 = vrcp.f32 %v2940_v55  ;;  %4180 = vmatprep.subr.bf16.mxu1 %v4447_v41 }
0x139c   : > { %v3053_v22 = vpop.permute.xlu1 %3052 }
0x139d   : > { %v4396_v25 = vpop.eup %4395  ;;  %v3058_v2 = vsel %vm1099_vm3, %v3053_v22, 0 }
0x139e   : > { %v2948_v56 = vmul.f32 %v4396_v25, %v4388_v7  ;;  %v2957_v57 = vpop.permute.xlu0 %2956 }
0x139f   : > { %v4398_v59 = vpop.eup %4397  ;;  %v2962_v60 = vsel %vm1099_vm3, %v2957_v57, 0 }
0x13a0   : > { %v2949_v62 = vmul.f32 %v4398_v59, %v4390_v38  ;;  %4163 = vmatpush3.bf16.msra.mxu0 %v2962_v60  ;;  %v2952_v63 = vpack.c.bf16 %v2948_v56, %v2948_v56 }
0x13a1   : > { %4174 = vmatprep.subr.bf16.mxu0 %v4447_v41 }
0x13a2   : > { %v2953_v0 = vpack.c.bf16 %v2949_v62, %v2949_v62 }
0x13a3   : > { %4165 = vmatmul.mubr.msk.bf16.vlgmr.msra.gmra.mrb[68].mxu0 %vm1045_vm2, %v2952_v63 }
0x13a4   : > { %4171 = vmatmul.mubr.msk.bf16.vlgmr.msra.gmra.mrb[64].mxu1 %vm1045_vm2, %v2953_v0  ;;  %4175 = vmatpush3.bf16.msra.mxu0 %v3058_v2 }
0x13a5   : > { %v4400_v3 = vpop.eup %4399  ;;  %4176 = vmatprep.mubr.msk.bf16.mxu0 %vm4448_vm0, %v4447_v41  ;;  %4182 = vmatprep.mubr.msk.bf16.mxu1 %vm4448_vm0, %v4447_v41 }
0x13a6   : > { %v2950_v4 = vmul.f32 %v4400_v3, %v4392_v40  ;;  %4186 = vmatprep.subr.bf16.mxu0 %v4281_v29 }
0x13a8   : > { %v2954_v5 = vpack.c.bf16 %v2950_v4, %v2950_v4 }
0x13ab   : > { %4177 = vmatmul.mubr.msk.bf16.vlgmr.msra.gmra.mrb[72].mxu0 %vm1045_vm2, %v2954_v5 }
0x13ac   : > { %4187 = vmatpush3.bf16.msra.mxu0 %v4281_v29 }
0x13ad   : > { %4188 = vmatprep.subr.bf16.mxu0 %v4282_v45 }
0x13b0   : > { %4189 = vmatpush3.bf16.msra.mxu0 %v4282_v45 }
0x13cd   : > { %v2943_v8 = vpop.xlane.xlu1 %2942 }
0x13ce   : > { %4401 = vrcp.f32 %v2943_v8 }
0x13d1   : > { %v3101_v14 = vpop.permute.xlu1 %3100 }
0x13d2   : > { %v3106_v16 = vsel %vm1099_vm3, %v3101_v14, 0 }
0x13d3   : > { %4181 = vmatpush3.bf16.msra.mxu1 %v3106_v16 }
0x13d8   : > { %v4402_v1 = vpop.eup %4401 }
0x13d9   : > { %v2951_v12 = vmul.f32 %v4402_v1, %v4394_v50 }
0x13db   : > { %v2955_v28 = vpack.c.bf16 %v2951_v12, %v2951_v12 }
0x13dd   : > { %4183 = vmatmul.mubr.msk.bf16.vlgmr.msra.gmra.mrb[68].mxu1 %vm1045_vm2, %v2955_v28 }
0x1476   : > { %v2998_v41 = vpop.f32.mrb[68].mxu0 }
0x1477   : > { %v4166_v26 = vpop.f32.mrb[69].mxu0  ;;  %v3046_v20 = vpop.f32.mrb[64].mxu1 }
0x1478   : > { %v4259_v23 = vpack.i.bf16 %v3046_v20, %v2998_v41  ;;  %v3001_v13 = vpop.f32.mrb[70].mxu0  ;;  %v4172_v49 = vpop.f32.mrb[65].mxu1 }
0x1479   : > { %v4167_v24 = vpop.f32.mrb[71].mxu0  ;;  %v3049_v46 = vpop.f32.mrb[66].mxu1  ;;  %v4283_v13 = vld [vmem:[%s5252_s9 + $0x10] sm:$0xff]   ;;  %v4284_v49 = vld [vmem:[%s5252_s9 + $0x18] sm:$0xff]  }
0x147a   : > { %4260 = vrot.lane.b32.xlu0 %v4259_v23, %s5264_s21  ;;  %v4173_v31 = vpop.f32.mrb[67].mxu1  ;;  %4194 = vmatprep.subr.bf16.mxu1 %v4283_v13 }
0x147b   : > { %4195 = vmatpush3.bf16.msra.mxu1 %v4283_v13 }
0x147c   : > { %4196 = vmatprep.subr.bf16.mxu1 %v4284_v49 }
0x147e   : > { %v3094_v27 = vpop.f32.mrb[72].mxu0 }
0x147f   : > { %v4178_v30 = vpop.f32.mrb[73].mxu0  ;;  %4197 = vmatpush3.bf16.msra.mxu1 %v4284_v49 }
0x1480   : > { %v3097_v43 = vpop.f32.mrb[74].mxu0 }
0x1481   : > { %v4179_v32 = vpop.f32.mrb[75].mxu0 }
0x14b0   : > { %v3142_v47 = vpop.f32.mrb[68].mxu1 }
0x14b1   : > { %v4264_v10 = vpack.i.bf16 %v3142_v47, %v3094_v27  ;;  %v4184_v6 = vpop.f32.mrb[69].mxu1 }
0x14b2   : > { %v3145_v33 = vpop.f32.mrb[70].mxu1 }
0x14b3   : > { %4265 = vrot.lane.b32.xlu1 %v4264_v10, %s5264_s21  ;;  %v4185_v34 = vpop.f32.mrb[71].mxu1 }
0x14ec   : > { %v4261_v36 = vpop.permute.xlu0 %4260 }
0x14ed   : > { %v4263_v7 = vunpack.i.h.bf16 %v4261_v36  ;;  %v4262_v37 = vunpack.i.l.bf16 %v4261_v36  ;;  %v3803_v36 = vld [vmem:[%s5250_s7 + $0x1] ss:$0 sm:$0xff] }
0x14ef   : > { %v3165_v38 = vsel %vm854_vm1, %v5101_v53, %v4263_v7  ;;  %v3164_v39 = vsel %vm854_vm1, %v5099_v51, %v4262_v37  ;;  %v3800_v51 = vld [vmem:[%s5249_s6 + $0x1] ss:$0 sm:$0xff] }
0x14f0   : > { %v3173_v40 = vpack.c.bf16 %v3165_v38, %v3164_v39 }
0x14f2   : > { %4190 = vmatprep.mubr.msk.bf16.mxu0 %vm693_vm15, %v3173_v40 }
0x1525   : > { %v4266_v42 = vpop.permute.xlu1 %4265 }
0x1526   : > { %v4268_v44 = vunpack.i.h.bf16 %v4266_v42  ;;  %v4267_v9 = vunpack.i.l.bf16 %v4266_v42  ;;  %v3804_v42 = vld [vmem:[%s5251_s8 + $0x1] ss:$0 sm:$0xff] }
0x1528   : > { %v3167_v48 = vsel %vm854_vm1, %v5105_v61, %v4268_v44  ;;  %v3166_v50 = vsel %vm854_vm1, %v5103_v58, %v4267_v9 }
0x1529   : > { %v3174_v52 = vpack.c.bf16 %v3167_v48, %v3166_v50 }
0x152b   : > { %4191 = vmatmul.mubr.msk.bf16.vlgmr.msra.gmra.mrb[76].mxu0 %vm693_vm15, %v3174_v52 }
0x15fe   : > { %v4192_v11 = vpop.f32.mrb[76].mxu0 }
0x15ff   : > { %v3227_v53 = vpop.f32.mrb[77].mxu0  ;;  %v3244_v35 = vadd.f32 %v4192_v11, %v4948_v17 }
0x1600   : > { %v3242_v54 = vadd.f32 %v3227_v53, %v4944_v15  ;;  %v4193_v21 = vpop.f32.mrb[78].mxu0 }
0x1601   : > { %v3230_v55 = vpop.f32.mrb[79].mxu0  ;;  %v5163_v58 = vadd.f32 %v3800_v51, %v3244_v35  ;;  %v3245_v56 = vadd.f32 %v4193_v21, %v4954_v19 }
0x1602   : > { %v5160_v25 = vadd.f32 %v3800_v51, %v3242_v54  ;;  %v3243_v61 = vadd.f32 %v3230_v55, %v4950_v18 }
0x1603   : > { %v5172_v15 = vadd.f32 %v3800_v51, %v3245_v56  ;;  %v3268_v60 = vsel %vm693_vm15, %v5163_v58, 0.0  ;;  %v4286_v56 = vld [vmem:[%s5254_s11 + $0x28] sm:$0xff]  }
0x1604   : > { %v5166_v57 = vadd.f32 %v3800_v51, %v3243_v61  ;;  %v3262_v59 = vsel %vm693_vm15, %v5160_v25, 0.0  ;;  %v4285_v61 = vld [vmem:[%s5254_s11 + $0x20] sm:$0xff]  }
0x1605   : > { %3263 = vadd.xlane.f32.xlu0 %v3262_v59  ;;  %v3271_v18 = vsel %vm693_vm15, %v5172_v15, 0.0  ;;  %4202 = vmatprep.subr.bf16.mxu0 %v4285_v61  ;;  %v4287_v59 = vld [vmem:[%s5254_s11 + $0x30] sm:$0xff]  }
0x1606   : > { %v3265_v17 = vsel %vm693_vm15, %v5166_v57, 0.0  ;;  %4203 = vmatpush3.bf16.msra.mxu0 %v4285_v61 }
0x1607   : > { %3266 = vadd.xlane.f32.xlu1 %v3265_v17  ;;  %4204 = vmatprep.subr.bf16.mxu0 %v4286_v56  ;;  %v4288_v17 = vld [vmem:[%s5254_s11 + $0x38] sm:$0xff]  }
0x1609   : > { %3269 = vadd.xlane.f32.xlu0 %v3268_v60  ;;  %v3810_v60 = vld [vmem:[%s5253_s10 + $0x1] ss:$0 sm:$0xff] }
0x160a   : > { %4205 = vmatpush3.bf16.msra.mxu0 %v4286_v56 }
0x160b   : > { %4206 = vmatprep.subr.bf16.mxu0 %v4287_v59 }
0x160d   : > { %3272 = vadd.xlane.f32.xlu0 %v3271_v18 }
0x160e   : > { %4207 = vmatpush3.bf16.msra.mxu0 %v4287_v59 }
0x160f   : > { %4208 = vmatprep.subr.bf16.mxu0 %v4288_v17 }
0x1612   : > { %4209 = vmatpush3.bf16.msra.mxu0 %v4288_v17 }
0x1692   : > { %v3264_v19 = vpop.xlane.xlu0 %3263 }
0x1693   : > { %v3274_v62 = vmul.f32 0.03125, %v3264_v19 }
0x1694   : > { %v3267_v22 = vpop.xlane.xlu1 %3266 }
0x1695   : > { %v3278_v63 = vsub.f32 %v5160_v25, %v3274_v62  ;;  %v3275_v0 = vmul.f32 0.03125, %v3267_v22 }
0x1696   : > { %v3270_v2 = vpop.xlane.xlu0 %3269 }
0x1697   : > { %v3279_v3 = vsub.f32 %v5166_v57, %v3275_v0  ;;  %v3276_v4 = vmul.f32 0.03125, %v3270_v2  ;;  %v3282_v5 = vmul.f32 %v3278_v63, %v3278_v63 }
0x1699   : > { %v3280_v8 = vsub.f32 %v5163_v58, %v3276_v4  ;;  %v3286_v14 = vsel %vm693_vm15, %v3282_v5, 0.0  ;;  %v3283_v16 = vmul.f32 %v3279_v3, %v3279_v3 }
0x169a   : > { %3287 = vadd.xlane.f32.xlu0 %v3286_v14  ;;  %v3273_v1 = vpop.xlane.xlu0 %3272 }
0x169b   : > { %v3277_v12 = vmul.f32 0.03125, %v3273_v1  ;;  %v3289_v28 = vsel %vm693_vm15, %v3283_v16, 0.0  ;;  %v3284_v29 = vmul.f32 %v3280_v8, %v3280_v8 }
0x169c   : > { %3290 = vadd.xlane.f32.xlu1 %v3289_v28 }
0x169d   : > { %v3281_v41 = vsub.f32 %v5172_v15, %v3277_v12  ;;  %v3292_v26 = vsel %vm693_vm15, %v3284_v29, 0.0 }
0x169e   : > { %3293 = vadd.xlane.f32.xlu0 %v3292_v26 }
0x169f   : > { %v3285_v20 = vmul.f32 %v3281_v41, %v3281_v41 }
0x16a1   : > { %v3295_v23 = vsel %vm693_vm15, %v3285_v20, 0.0 }
0x16a2   : > { %3296 = vadd.xlane.f32.xlu1 %v3295_v23 }
0x1727   : > { %v3288_v24 = vpop.xlane.xlu0 %3287 }
0x1728   : > { %v3298_v46 = vmul.f32 0.03125, %v3288_v24 }
0x1729   : > { %v3291_v31 = vpop.xlane.xlu1 %3290 }
0x172a   : > { %v3302_v27 = vadd.f32 1e-05, %v3298_v46  ;;  %v3299_v30 = vmul.f32 0.03125, %v3291_v31 }
0x172b   : > { %v3294_v43 = vpop.xlane.xlu0 %3293 }
0x172c   : > { %4403 = vrsqrt.f32 %v3302_v27  ;;  %v3303_v32 = vadd.f32 1e-05, %v3299_v30  ;;  %v3300_v45 = vmul.f32 0.03125, %v3294_v43 }
0x172e   : > { %4405 = vrsqrt.f32 %v3303_v32  ;;  %v3304_v47 = vadd.f32 1e-05, %v3300_v45  ;;  %v4289_v45 = vld [vmem:[%s5256_s13] sm:$0xff]  }
0x172f   : > { %v3297_v10 = vpop.xlane.xlu1 %3296  ;;  %4214 = vmatprep.subr.bf16.mxu1 %v4289_v45 }
0x1730   : > { %4407 = vrsqrt.f32 %v3304_v47  ;;  %v3301_v6 = vmul.f32 0.03125, %v3297_v10  ;;  %v4290_v47 = vld [vmem:[%s5256_s13 + $0x8] sm:$0xff]  }
0x1732   : > { %v3305_v33 = vadd.f32 1e-05, %v3301_v6 }
0x1734   : > { %4409 = vrsqrt.f32 %v3305_v33 }
0x1736   : > { %v4404_v34 = vpop.eup %4403 }
0x1737   : > { %v3310_v7 = vmul.f32 %v4404_v34, %v3278_v63  ;;  %v3830_v34 = vld [vmem:[%s5255_s12 + $0x1] ss:$0 sm:$0xff] }
0x1738   : > { %v4406_v37 = vpop.eup %4405 }
0x1739   : > { %v3311_v38 = vmul.f32 %v4406_v37, %v3279_v3  ;;  %v3320_v39 = vmul.f32 %v3803_v36, %v3310_v7 }
0x173a   : > { %v4408_v40 = vpop.eup %4407 }
0x173b   : > { %v3312_v44 = vmul.f32 %v4408_v40, %v3280_v8  ;;  %v3321_v9 = vmul.f32 %v3803_v36, %v3311_v38  ;;  %v3330_v48 = vadd.f32 %v3804_v42, %v3320_v39 }
0x173d   : > { %v3331_v50 = vadd.f32 %v3804_v42, %v3321_v9  ;;  %v3322_v11 = vmul.f32 %v3803_v36, %v3312_v44 }
0x173e   : > { %v4410_v52 = vpop.eup %4409 }
0x173f   : > { %v3313_v51 = vmul.f32 %v4410_v52, %v3281_v41  ;;  %v3339_v53 = vpack.c.bf16 %v3331_v50, %v3330_v48  ;;  %v3332_v54 = vadd.f32 %v3804_v42, %v3322_v11 }
0x1741   : > { %v3323_v35 = vmul.f32 %v3803_v36, %v3313_v51  ;;  %4198 = vmatprep.mubr.msk.bf16.mxu1 %vm693_vm15, %v3339_v53 }
0x1743   : > { %v3333_v21 = vadd.f32 %v3804_v42, %v3323_v35 }
0x1745   : > { %v3340_v55 = vpack.c.bf16 %v3333_v21, %v3332_v54 }
0x1747   : > { %4199 = vmatmul.mubr.msk.bf16.vlgmr.msra.gmra.mrb[72].mxu1 %vm693_vm15, %v3340_v55 }
0x1748   : > { %4215 = vmatpush3.bf16.msra.mxu1 %v4289_v45 }
0x1749   : > { %4216 = vmatprep.subr.bf16.mxu1 %v4290_v47 }
0x174c   : > { %4217 = vmatpush3.bf16.msra.mxu1 %v4290_v47 }
0x181a   : > { %v4200_v18 = vpop.f32.mrb[72].mxu1 }
0x181b   : > { %v3410_v19 = vadd.f32 %v4200_v18, %v3810_v60  ;;  %v3401_v62 = vpop.f32.mrb[73].mxu1 }
0x181c   : > { %v3402_v22 = vadd.f32 %v3810_v60, %v3401_v62  ;;  %v4201_v63 = vpop.f32.mrb[74].mxu1 }
0x181d   : > { %v3422_v0 = vmul.f32 0.70710677, %v3410_v19  ;;  %v3413_v2 = vadd.f32 %v4201_v63, %v3810_v60  ;;  %v3404_v3 = vpop.f32.mrb[75].mxu1  ;;  %v3418_v26 = vmul.f32 0.5, %v3410_v19 }
0x181e   : > { %v3420_v4 = vmul.f32 0.70710677, %v3402_v22  ;;  %v3405_v5 = vadd.f32 %v3810_v60, %v3404_v3  ;;  %v3416_v13 = vmul.f32 0.5, %v3402_v22 }
0x181f   : > { %4411 = verf.f32 %v3422_v0  ;;  %v3423_v8 = vmul.f32 0.70710677, %v3413_v2  ;;  %v3419_v20 = vmul.f32 0.5, %v3413_v2 }
0x1820   : > { %4413 = verf.f32 %v3420_v4  ;;  %v3421_v14 = vmul.f32 0.70710677, %v3405_v5  ;;  %v3417_v49 = vmul.f32 0.5, %v3405_v5 }
0x1821   : > { %4415 = verf.f32 %v3423_v8 }
0x1822   : > { %4417 = verf.f32 %v3421_v14 }
0x1829   : > { %v4412_v16 = vpop.eup %4411 }
0x182a   : > { %v4414_v1 = vpop.eup %4413  ;;  %v3430_v12 = vadd.f32 1.0, %v4412_v16 }
0x182b   : > { %v4416_v28 = vpop.eup %4415  ;;  %v3428_v29 = vadd.f32 1.0, %v4414_v1 }
0x182c   : > { %v4418_v41 = vpop.eup %4417  ;;  %v3431_v23 = vadd.f32 1.0, %v4416_v28  ;;  %v3434_v46 = vmul.f32 %v3430_v12, %v3418_v26 }
0x182d   : > { %v3429_v24 = vadd.f32 1.0, %v4418_v41  ;;  %v3432_v27 = vmul.f32 %v3428_v29, %v3416_v13 }
0x182e   : > { %v3435_v31 = vmul.f32 %v3431_v23, %v3419_v20 }
0x182f   : > { %v3433_v30 = vmul.f32 %v3429_v24, %v3417_v49 }
0x1830   : > { %v3446_v43 = vpack.c.bf16 %v3435_v31, %v3434_v46 }
0x1831   : > { %v3445_v32 = vpack.c.bf16 %v3433_v30, %v3432_v27 }
0x1833   : > { %4210 = vmatprep.mubr.msk.bf16.mxu0 %vm2043_vm4, %v3445_v32 }
0x1834   : > { %4211 = vmatmul.mubr.msk.bf16.vlgmr.msra.gmra.mrb[80].mxu0 %vm2043_vm4, %v3446_v43 }
0x1907   : > { %v4212_v10 = vpop.f32.mrb[80].mxu0 }
0x1908   : > { %v3528_v6 = vadd.f32 %v4212_v10, %v5163_v58  ;;  %v3511_v33 = vpop.f32.mrb[81].mxu0 }
0x1909   : > { %v3526_v36 = vadd.f32 %v3511_v33, %v5160_v25  ;;  %v4213_v7 = vpop.f32.mrb[82].mxu0  ;;  %v3831_v25 = vld [vmem:[%s5257_s14] ss:$0 sm:$0xff] }
0x190a   : > { %v3529_v37 = vadd.f32 %v4213_v7, %v5172_v15  ;;  %v3514_v38 = vpop.f32.mrb[83].mxu0  ;;  %v3540_v40 = vadd.f32 %v3830_v34, %v3528_v6 }
0x190b   : > { %v3527_v39 = vadd.f32 %v3514_v38, %v5166_v57  ;;  %v3538_v44 = vadd.f32 %v3830_v34, %v3526_v36 }
0x190c   : > { %v3541_v42 = vadd.f32 %v3830_v34, %v3529_v37 }
0x190d   : > { %v3539_v9 = vadd.f32 %v3830_v34, %v3527_v39 }
0x190e   : > { %v3547_v48 = vpack.c.bf16 %v3541_v42, %v3540_v40 }
0x190f   : > { %v3546_v58 = vpack.c.bf16 %v3539_v9, %v3538_v44 }
0x1911   : > { %4218 = vmatprep.mubr.msk.bf16.mxu1 %vm693_vm15, %v3546_v58 }
0x1912   : > { %4219 = vmatmul.mubr.msk.bf16.vlgmr.msra.gmra.mrb[76].mxu1 %vm693_vm15, %v3547_v48 }
0x19e5   : > { %v4220_v50 = vpop.f32.mrb[76].mxu1 }
0x19e6   : > { %v3607_v57 = vpop.f32.mrb[77].mxu1  ;;  %v3616_v53 = vadd.f32 %v4220_v50, %v3831_v25 }
0x19e7   : > { %v3608_v15 = vadd.f32 %v3831_v25, %v3607_v57  ;;  %v4221_v52 = vpop.f32.mrb[78].mxu1 }
0x19e8   : > { %v3610_v11 = vpop.f32.mrb[79].mxu1  ;;  %v3619_v35 = vadd.f32 %v4221_v52, %v3831_v25  ;;  %3625 = vst.msk [vmem:[%s510_s29 + $0x10] sm:$0xff] %vm3622_vm5, %v3616_v53 }
0x19e9   : > { %3623 = vst.msk [vmem:[%s510_s29] sm:$0xff] %vm3622_vm5, %v3608_v15  ;;  %v3611_v51 = vadd.f32 %v3831_v25, %v3610_v11 }
0x19ea   : > { %3626 = vst.msk [vmem:[%s510_s29 + $0x18] sm:$0xff] %vm3622_vm5, %v3619_v35 }
0x19eb   : > { %3624 = vst.msk [vmem:[%s510_s29 + $0x8] sm:$0xff] %vm3622_vm5, %v3611_v51 }
0x19ec PF: > { %s26_s18 = sadd.s32 1, %s4444_s18  }
0x19ed   : > { %p23_p1 = scmp.ge.s32.totalorder %s26_s18, 4  }
0x19ef   :  { %25 = sbr.rel (!%p23_p1) target bundleno = 1 (0x1), region = 126 }
0x19f6   :  { %3649 = vsyncpa [#allocation3], 1 }
0x19f7   :  { %3651 = vsyncpa [#allocation3 + $0x1], 1 }

</bundles_post_ra>
